<compile_context>
chip_gen: v7x
topology: tpu7x:2x2x1
jax: 0.10.0
libtpu: 0.0.40
codegen_flags: <defaults>
</compile_context>

<pallas_src>
import functools

import jax
import jax.numpy as jnp
from jax import lax
from jax.experimental import pallas as pl
from jax.experimental.pallas import tpu as pltpu


CFG = dict(vocab=64, max_pos=16, hidden=32, heads=4, head_dim=8,
           intermediate=64, layers=2, output_size=16)

LN_EPS = 1e-12
_INV_SQRT2 = 0.7071067811865476


# --------------------------------------------------------------------------------------
# In-kernel helpers (all f32 epilogues)
# --------------------------------------------------------------------------------------

def _gelu_exact(x):                           # HF BERT exact (erf) GELU
    return 0.5 * x * (1.0 + lax.erf(x * _INV_SQRT2))


def _layernorm(x, g, b, eps=LN_EPS):
    mu = jnp.mean(x, axis=-1, keepdims=True)
    var = jnp.mean(jnp.square(x - mu), axis=-1, keepdims=True)
    return (x - mu) * lax.rsqrt(var + eps) * g + b


# --------------------------------------------------------------------------------------
# Single fused Pallas kernel: embeddings-LN -> L encoder layers -> pooler -> classifier
# --------------------------------------------------------------------------------------

def _fused_forward_kernel(mask_ref, we_ref, pe_ref, te_ref, embg_ref, embb_ref,
                          wq_ref, bq_ref, wk_ref, bk_ref, wv_ref, bv_ref,
                          wo_ref, bo_ref, ln1g_ref, ln1b_ref,
                          w1_ref, b1_ref, w2_ref, b2_ref, ln2g_ref, ln2b_ref,
                          wp_ref, bp_ref, wf_ref, bf_ref,
                          o_ref):
    L, nh, H, dh = wq_ref.shape
    S = we_ref.shape[1]
    scale = 1.0 / (dh ** 0.5)

    # ---- embeddings: word + position + token_type(=0), then LayerNorm (f32) ----
    x = we_ref[0] + pe_ref[...] + te_ref[...]                      # (S, H)
    x = _layernorm(x, embg_ref[...], embb_ref[...])

    # ---- HF extended attention mask, computed in-kernel from the int32 mask ----
    m = mask_ref[0].astype(jnp.float32)                            # (1, S)
    addm = ((1.0 - m) * -10000.0)[:, None, :]                      # (1, 1, S) -> (nh, S, S)

    dn_proj = (((2,), (1,)), ((0,), (0,)))                         # 'nsh,nhd->nsd'
    dn_score = (((2,), (2,)), ((0,), (0,)))                        # 'nqd,nkd->nqk'
    dn_ctx = (((2,), (1,)), ((0,), (0,)))                          # 'nqk,nkd->nqd'

    for l in range(L):                                             # L=2: static unroll is fine
        x_bf = x.astype(jnp.bfloat16)
        xb = jnp.broadcast_to(x_bf, (nh, S, H))                    # head-batched residual view

        # head-batched Q/K/V projections (weights stored head-major: (nh, H, dh))
        q = lax.dot_general(xb, wq_ref[l], dn_proj,
                            preferred_element_type=jnp.float32) + bq_ref[l]    # (nh, S, dh)
        k = lax.dot_general(xb, wk_ref[l], dn_proj,
                            preferred_element_type=jnp.float32) + bk_ref[l]
        v = lax.dot_general(xb, wv_ref[l], dn_proj,
                            preferred_element_type=jnp.float32) + bv_ref[l]

        # scaled-dot-product attention, batched over heads (f32 softmax epilogue)
        s = lax.dot_general(q.astype(jnp.bfloat16), k.astype(jnp.bfloat16), dn_score,
                            preferred_element_type=jnp.float32) * scale + addm  # (nh, S, S)
        s = s - jnp.max(s, axis=-1, keepdims=True)
        p = jnp.exp(s)
        p = p * pl.reciprocal(jnp.sum(p, axis=-1, keepdims=True), approx=True)

        ctx = lax.dot_general(p.astype(jnp.bfloat16), v.astype(jnp.bfloat16), dn_ctx,
                              preferred_element_type=jnp.float32)               # (nh, S, dh)

        # output projection: head-batched matmul against head-major W_o, then sum over heads
        per_head = lax.dot_general(ctx.astype(jnp.bfloat16), wo_ref[l], dn_ctx,
                                   preferred_element_type=jnp.float32)          # (nh, S, H)
        attn = jnp.sum(per_head, axis=0) + bo_ref[l]                            # (S, H)

        # residual + LayerNorm 1
        h1 = _layernorm(attn + x, ln1g_ref[l], ln1b_ref[l])

        # FFN: W1 + exact-erf GELU + W2, residual + LayerNorm 2
        inter = jnp.dot(h1.astype(jnp.bfloat16), w1_ref[l],
                        preferred_element_type=jnp.float32) + b1_ref[l]
        inter = _gelu_exact(inter)
        ffn = jnp.dot(inter.astype(jnp.bfloat16), w2_ref[l],
                      preferred_element_type=jnp.float32) + b2_ref[l]
        x = _layernorm(ffn + h1, ln2g_ref[l], ln2b_ref[l])

    # ---- pooler([CLS] row) + classifier, all in-kernel (no extra launch / slice op) ----
    cls = x[0:1, :]                                                              # (1, H)
    pooled = jnp.tanh(jnp.dot(cls.astype(jnp.bfloat16), wp_ref[...],
                              preferred_element_type=jnp.float32) + bp_ref[...])
    o_ref[0] = jnp.dot(pooled.astype(jnp.bfloat16), wf_ref[...],
                       preferred_element_type=jnp.float32) + bf_ref[...]         # (1, O)


def pallas_bash_ai_fused(we, mask3, pe, te, p):
    B, S, H = we.shape
    O = p["fc_w"].shape[-1]

    def rep(arr):   # whole-array, grid-invariant block (weights / constants)
        n = arr.ndim
        return pl.BlockSpec(arr.shape, lambda b: (0,) * n)

    in_specs = [
        pl.BlockSpec((1, 1, S), lambda b: (b, 0, 0)),   # attention_mask (B,1,S) int32
        pl.BlockSpec((1, S, H), lambda b: (b, 0, 0)),   # gathered word embeddings (B,S,H)
        rep(pe), rep(te), rep(p["emb_ln_g"]), rep(p["emb_ln_b"]),
        rep(p["wq"]), rep(p["bq"]), rep(p["wk"]), rep(p["bk"]),
        rep(p["wv"]), rep(p["bv"]), rep(p["wo"]), rep(p["bo"]),
        rep(p["ln1_g"]), rep(p["ln1_b"]),
        rep(p["w1"]), rep(p["b1"]), rep(p["w2"]), rep(p["b2"]),
        rep(p["ln2_g"]), rep(p["ln2_b"]),
        rep(p["pooler_w"]), rep(p["pooler_b"]), rep(p["fc_w"]), rep(p["fc_b"]),
    ]

    out = pl.pallas_call(
        _fused_forward_kernel,
        out_shape=jax.ShapeDtypeStruct((B, 1, O), jnp.float32),
        grid=(B,),                                      # v7x: 2 TCs each take one sequence
        in_specs=in_specs,
        out_specs=pl.BlockSpec((1, 1, O), lambda b: (b, 0, 0)),
        compiler_params=pltpu.CompilerParams(dimension_semantics=("parallel",)),
    )(mask3, we, pe, te, p["emb_ln_g"], p["emb_ln_b"],
      p["wq"], p["bq"], p["wk"], p["bk"], p["wv"], p["bv"],
      p["wo"], p["bo"], p["ln1_g"], p["ln1_b"],
      p["w1"], p["b1"], p["w2"], p["b2"], p["ln2_g"], p["ln2_b"],
      p["pooler_w"], p["pooler_b"], p["fc_w"], p["fc_b"])
    return out.reshape(B, O)


# --------------------------------------------------------------------------------------
# Parameters and forward pass
# --------------------------------------------------------------------------------------

def init_params(key, cfg):
    H, I, O = cfg["hidden"], cfg["intermediate"], cfg["output_size"]
    L, nh, dh = cfg["layers"], cfg["heads"], cfg["head_dim"]
    keys = iter(jax.random.split(key, 32))

    def w(shape):
        return (0.02 * jax.random.normal(next(keys), shape, jnp.float32)).astype(jnp.bfloat16)

    # Per-layer weights are stacked along a leading L axis; Q/K/V/O are stored head-major
    # ((nh, H, dh) / (nh, dh, H)) -- an HF (H,H) checkpoint matrix maps onto this with a
    # one-time host-side reshape/transpose.
    return dict(
        word_emb=0.02 * jax.random.normal(next(keys), (cfg["vocab"], H), jnp.float32),
        pos_emb=0.02 * jax.random.normal(next(keys), (cfg["max_pos"], H), jnp.float32),
        type_emb=0.02 * jax.random.normal(next(keys), (2, H), jnp.float32),
        emb_ln_g=jnp.ones((1, H), jnp.float32), emb_ln_b=jnp.zeros((1, H), jnp.float32),
        wq=w((L, nh, H, dh)), bq=jnp.zeros((L, nh, 1, dh), jnp.float32),
        wk=w((L, nh, H, dh)), bk=jnp.zeros((L, nh, 1, dh), jnp.float32),
        wv=w((L, nh, H, dh)), bv=jnp.zeros((L, nh, 1, dh), jnp.float32),
        wo=w((L, nh, dh, H)), bo=jnp.zeros((L, 1, H), jnp.float32),
        ln1_g=jnp.ones((L, 1, H), jnp.float32), ln1_b=jnp.zeros((L, 1, H), jnp.float32),
        w1=w((L, H, I)), b1=jnp.zeros((L, 1, I), jnp.float32),
        w2=w((L, I, H)), b2=jnp.zeros((L, 1, H), jnp.float32),
        ln2_g=jnp.ones((L, 1, H), jnp.float32), ln2_b=jnp.zeros((L, 1, H), jnp.float32),
        pooler_w=w((H, H)), pooler_b=jnp.zeros((1, H), jnp.float32),
        fc_w=w((H, O)), fc_b=jnp.zeros((1, O), jnp.float32),
    )


def bash_ai_forward(params, input_ids, attention_mask, cfg=CFG):
    B, S = input_ids.shape
    # word-embedding gather stays in XLA (data-dependent gather); everything else is in-kernel
    we = jnp.take(params["word_emb"], input_ids, axis=0)            # (B, S, H)
    pe = params["pos_emb"][:S]                                      # (S, H)
    te = params["type_emb"][0:1]                                    # (1, H) token_type_ids == 0
    mask3 = attention_mask.astype(jnp.int32)[:, None, :]            # (B, 1, S) raw 0/1 mask
    return pallas_bash_ai_fused(we, mask3, pe, te, params)


# --------------------------------------------------------------------------------------
if __name__ == "__main__":
    key = jax.random.PRNGKey(0)
    k_param, k_ids = jax.random.split(key)

    B, S = 2, 8
    params = init_params(k_param, CFG)
    input_ids = jax.random.randint(k_ids, (B, S), 0, CFG["vocab"], dtype=jnp.int32)
    # second sequence has 2 padded positions to exercise the attention-mask path
    attention_mask = jnp.array([[1, 1, 1, 1, 1, 1, 1, 1],
                                [1, 1, 1, 1, 1, 1, 0, 0]], dtype=jnp.int32)

    fwd = jax.jit(functools.partial(bash_ai_forward, cfg=CFG))
    logits = fwd(params, input_ids, attention_mask)
    jax.block_until_ready(logits)

    assert logits.shape == (B, CFG["output_size"])
    assert bool(jnp.all(jnp.isfinite(logits)))
    print("KERNEL_OK")
</pallas_src>

<mosaic_0001>
module attributes {stable_mosaic.version = 11 : i64} {
  func.func @_fused_forward_kernel(%arg0: i32, %arg1: memref<1x1x8xi32, #tpu.memory_space<vmem>>, %arg2: memref<1x8x32xf32, #tpu.memory_space<vmem>>, %arg3: memref<8x32xf32, #tpu.memory_space<vmem>>, %arg4: memref<1x32xf32, #tpu.memory_space<vmem>>, %arg5: memref<1x32xf32, #tpu.memory_space<vmem>>, %arg6: memref<1x32xf32, #tpu.memory_space<vmem>>, %arg7: memref<2x4x32x8xbf16, #tpu.memory_space<vmem>>, %arg8: memref<2x4x1x8xf32, #tpu.memory_space<vmem>>, %arg9: memref<2x4x32x8xbf16, #tpu.memory_space<vmem>>, %arg10: memref<2x4x1x8xf32, #tpu.memory_space<vmem>>, %arg11: memref<2x4x32x8xbf16, #tpu.memory_space<vmem>>, %arg12: memref<2x4x1x8xf32, #tpu.memory_space<vmem>>, %arg13: memref<2x4x8x32xbf16, #tpu.memory_space<vmem>>, %arg14: memref<2x1x32xf32, #tpu.memory_space<vmem>>, %arg15: memref<2x1x32xf32, #tpu.memory_space<vmem>>, %arg16: memref<2x1x32xf32, #tpu.memory_space<vmem>>, %arg17: memref<2x32x64xbf16, #tpu.memory_space<vmem>>, %arg18: memref<2x1x64xf32, #tpu.memory_space<vmem>>, %arg19: memref<2x64x32xbf16, #tpu.memory_space<vmem>>, %arg20: memref<2x1x32xf32, #tpu.memory_space<vmem>>, %arg21: memref<2x1x32xf32, #tpu.memory_space<vmem>>, %arg22: memref<2x1x32xf32, #tpu.memory_space<vmem>>, %arg23: memref<32x32xbf16, #tpu.memory_space<vmem>>, %arg24: memref<1x32xf32, #tpu.memory_space<vmem>>, %arg25: memref<32x16xbf16, #tpu.memory_space<vmem>>, %arg26: memref<1x16xf32, #tpu.memory_space<vmem>>, %arg27: memref<1x1x16xf32, #tpu.memory_space<vmem>>) attributes {dimension_semantics = [#tpu.dimension_semantics<parallel>], iteration_bounds = array<i64: 2>, scalar_prefetch = 0 : i64, scratch_operands = 0 : i64, tpu.core_type = #tpu.core_type<tc>, window_params = [{transform_indices = @transform_0, window_bounds = array<i64: 1, 1, 8>}, {transform_indices = @transform_1, window_bounds = array<i64: 1, 8, 32>}, {pipeline_mode = #tpu.pipeline_mode<synchronous>, transform_indices = @transform_2, window_bounds = array<i64: 8, 32>}, {pipeline_mode = #tpu.pipeline_mode<synchronous>, transform_indices = @transform_3, window_bounds = array<i64: 1, 32>}, {pipeline_mode = #tpu.pipeline_mode<synchronous>, transform_indices = @transform_4, window_bounds = array<i64: 1, 32>}, {pipeline_mode = #tpu.pipeline_mode<synchronous>, transform_indices = @transform_5, window_bounds = array<i64: 1, 32>}, {pipeline_mode = #tpu.pipeline_mode<synchronous>, transform_indices = @transform_6, window_bounds = array<i64: 2, 4, 32, 8>}, {pipeline_mode = #tpu.pipeline_mode<synchronous>, transform_indices = @transform_7, window_bounds = array<i64: 2, 4, 1, 8>}, {pipeline_mode = #tpu.pipeline_mode<synchronous>, transform_indices = @transform_8, window_bounds = array<i64: 2, 4, 32, 8>}, {pipeline_mode = #tpu.pipeline_mode<synchronous>, transform_indices = @transform_9, window_bounds = array<i64: 2, 4, 1, 8>}, {pipeline_mode = #tpu.pipeline_mode<synchronous>, transform_indices = @transform_10, window_bounds = array<i64: 2, 4, 32, 8>}, {pipeline_mode = #tpu.pipeline_mode<synchronous>, transform_indices = @transform_11, window_bounds = array<i64: 2, 4, 1, 8>}, {pipeline_mode = #tpu.pipeline_mode<synchronous>, transform_indices = @transform_12, window_bounds = array<i64: 2, 4, 8, 32>}, {pipeline_mode = #tpu.pipeline_mode<synchronous>, transform_indices = @transform_13, window_bounds = array<i64: 2, 1, 32>}, {pipeline_mode = #tpu.pipeline_mode<synchronous>, transform_indices = @transform_14, window_bounds = array<i64: 2, 1, 32>}, {pipeline_mode = #tpu.pipeline_mode<synchronous>, transform_indices = @transform_15, window_bounds = array<i64: 2, 1, 32>}, {pipeline_mode = #tpu.pipeline_mode<synchronous>, transform_indices = @transform_16, window_bounds = array<i64: 2, 32, 64>}, {pipeline_mode = #tpu.pipeline_mode<synchronous>, transform_indices = @transform_17, window_bounds = array<i64: 2, 1, 64>}, {pipeline_mode = #tpu.pipeline_mode<synchronous>, transform_indices = @transform_18, window_bounds = array<i64: 2, 64, 32>}, {pipeline_mode = #tpu.pipeline_mode<synchronous>, transform_indices = @transform_19, window_bounds = array<i64: 2, 1, 32>}, {pipeline_mode = #tpu.pipeline_mode<synchronous>, transform_indices = @transform_20, window_bounds = array<i64: 2, 1, 32>}, {pipeline_mode = #tpu.pipeline_mode<synchronous>, transform_indices = @transform_21, window_bounds = array<i64: 2, 1, 32>}, {pipeline_mode = #tpu.pipeline_mode<synchronous>, transform_indices = @transform_22, window_bounds = array<i64: 32, 32>}, {pipeline_mode = #tpu.pipeline_mode<synchronous>, transform_indices = @transform_23, window_bounds = array<i64: 1, 32>}, {pipeline_mode = #tpu.pipeline_mode<synchronous>, transform_indices = @transform_24, window_bounds = array<i64: 32, 16>}, {pipeline_mode = #tpu.pipeline_mode<synchronous>, transform_indices = @transform_25, window_bounds = array<i64: 1, 16>}, {transform_indices = @transform_26, window_bounds = array<i64: 1, 1, 16>}]} {
    %c0 = arith.constant 0 : index
    %c0_0 = arith.constant 0 : index
    %c0_1 = arith.constant 0 : index
    %0 = vector.load %arg2[%c0, %c0_0, %c0_1] : memref<1x8x32xf32, #tpu.memory_space<vmem>>, vector<1x8x32xf32>
    %1 = vector.shape_cast %0 : vector<1x8x32xf32> to vector<8x32xf32>
    %c0_2 = arith.constant 0 : index
    %c0_3 = arith.constant 0 : index
    %2 = vector.load %arg3[%c0_2, %c0_3] : memref<8x32xf32, #tpu.memory_space<vmem>>, vector<8x32xf32>
    %3 = arith.addf %1, %2 : vector<8x32xf32>
    %c0_4 = arith.constant 0 : index
    %c0_5 = arith.constant 0 : index
    %4 = vector.load %arg4[%c0_4, %c0_5] : memref<1x32xf32, #tpu.memory_space<vmem>>, vector<1x32xf32>
    %5 = vector.broadcast %4 : vector<1x32xf32> to vector<8x32xf32>
    %6 = arith.addf %3, %5 : vector<8x32xf32>
    %c0_6 = arith.constant 0 : index
    %c0_7 = arith.constant 0 : index
    %7 = vector.load %arg5[%c0_6, %c0_7] : memref<1x32xf32, #tpu.memory_space<vmem>>, vector<1x32xf32>
    %c0_8 = arith.constant 0 : index
    %c0_9 = arith.constant 0 : index
    %8 = vector.load %arg6[%c0_8, %c0_9] : memref<1x32xf32, #tpu.memory_space<vmem>>, vector<1x32xf32>
    %cst = arith.constant dense<0.000000e+00> : vector<8xf32>
    %9 = vector.multi_reduction <add>, %6, %cst [1] : vector<8x32xf32> to vector<8xf32>
    %10 = vector.shape_cast %9 : vector<8xf32> to vector<8x1xf32>
    %cst_10 = arith.constant 3.200000e+01 : f32
    %11 = vector.broadcast %cst_10 : f32 to vector<8x1xf32>
    %12 = arith.divf %10, %11 : vector<8x1xf32>
    %13 = vector.broadcast %12 : vector<8x1xf32> to vector<8x32xf32>
    %14 = arith.subf %6, %13 : vector<8x32xf32>
    %15 = arith.mulf %14, %14 : vector<8x32xf32>
    %cst_11 = arith.constant dense<0.000000e+00> : vector<8xf32>
    %16 = vector.multi_reduction <add>, %15, %cst_11 [1] : vector<8x32xf32> to vector<8xf32>
    %17 = vector.shape_cast %16 : vector<8xf32> to vector<8x1xf32>
    %cst_12 = arith.constant 3.200000e+01 : f32
    %18 = vector.broadcast %cst_12 : f32 to vector<8x1xf32>
    %19 = arith.divf %17, %18 : vector<8x1xf32>
    %20 = vector.broadcast %12 : vector<8x1xf32> to vector<8x32xf32>
    %21 = arith.subf %6, %20 : vector<8x32xf32>
    %cst_13 = arith.constant 9.99999996E-13 : f32
    %22 = vector.broadcast %cst_13 : f32 to vector<8x1xf32>
    %23 = arith.addf %19, %22 : vector<8x1xf32>
    %24 = math.rsqrt %23 : vector<8x1xf32>
    %25 = vector.broadcast %24 : vector<8x1xf32> to vector<8x32xf32>
    %26 = arith.mulf %21, %25 : vector<8x32xf32>
    %27 = vector.broadcast %7 : vector<1x32xf32> to vector<8x32xf32>
    %28 = arith.mulf %26, %27 : vector<8x32xf32>
    %29 = vector.broadcast %8 : vector<1x32xf32> to vector<8x32xf32>
    %30 = arith.addf %28, %29 : vector<8x32xf32>
    %c0_14 = arith.constant 0 : index
    %c0_15 = arith.constant 0 : index
    %c0_16 = arith.constant 0 : index
    %31 = vector.load %arg1[%c0_14, %c0_15, %c0_16] : memref<1x1x8xi32, #tpu.memory_space<vmem>>, vector<1x1x8xi32>
    %32 = vector.shape_cast %31 : vector<1x1x8xi32> to vector<1x8xi32>
    %33 = arith.sitofp %32 : vector<1x8xi32> to vector<1x8xf32>
    %cst_17 = arith.constant 1.000000e+00 : f32
    %34 = vector.broadcast %cst_17 : f32 to vector<1x8xf32>
    %35 = arith.subf %34, %33 : vector<1x8xf32>
    %cst_18 = arith.constant -1.000000e+04 : f32
    %36 = vector.broadcast %cst_18 : f32 to vector<1x8xf32>
    %37 = arith.mulf %35, %36 : vector<1x8xf32>
    %38 = vector.shape_cast %37 : vector<1x8xf32> to vector<1x1x8xf32>
    %39 = arith.truncf %30 : vector<8x32xf32> to vector<8x32xbf16>
    %40 = vector.shape_cast %39 : vector<8x32xbf16> to vector<1x8x32xbf16>
    %41 = vector.broadcast %40 : vector<1x8x32xbf16> to vector<4x8x32xbf16>
    %c0_19 = arith.constant 0 : index
    %c0_20 = arith.constant 0 : index
    %c0_21 = arith.constant 0 : index
    %c0_22 = arith.constant 0 : index
    %42 = vector.load %arg7[%c0_19, %c0_20, %c0_21, %c0_22] : memref<2x4x32x8xbf16, #tpu.memory_space<vmem>>, vector<1x4x32x8xbf16>
    %43 = vector.shape_cast %42 : vector<1x4x32x8xbf16> to vector<4x32x8xbf16>
    %cst_23 = arith.constant dense<0.000000e+00> : vector<4x8x8xf32>
    %44 = tpu.matmul %41, %43, %cst_23 {dimension_numbers = #tpu.dot_dimension_numbers<[2], [1], [1], [2], [0, 0, 0, 1, 1, 2], [0], [0]>} : vector<4x8x32xbf16>, vector<4x32x8xbf16>, vector<4x8x8xf32> -> vector<4x8x8xf32>
    %c0_24 = arith.constant 0 : index
    %c0_25 = arith.constant 0 : index
    %c0_26 = arith.constant 0 : index
    %c0_27 = arith.constant 0 : index
    %45 = vector.load %arg8[%c0_24, %c0_25, %c0_26, %c0_27] : memref<2x4x1x8xf32, #tpu.memory_space<vmem>>, vector<1x4x1x8xf32>
    %46 = vector.shape_cast %45 : vector<1x4x1x8xf32> to vector<4x1x8xf32>
    %47 = vector.broadcast %46 : vector<4x1x8xf32> to vector<4x8x8xf32>
    %48 = arith.addf %44, %47 : vector<4x8x8xf32>
    %c0_28 = arith.constant 0 : index
    %c0_29 = arith.constant 0 : index
    %c0_30 = arith.constant 0 : index
    %c0_31 = arith.constant 0 : index
    %49 = vector.load %arg9[%c0_28, %c0_29, %c0_30, %c0_31] : memref<2x4x32x8xbf16, #tpu.memory_space<vmem>>, vector<1x4x32x8xbf16>
    %50 = vector.shape_cast %49 : vector<1x4x32x8xbf16> to vector<4x32x8xbf16>
    %cst_32 = arith.constant dense<0.000000e+00> : vector<4x8x8xf32>
    %51 = tpu.matmul %41, %50, %cst_32 {dimension_numbers = #tpu.dot_dimension_numbers<[2], [1], [1], [2], [0, 0, 0, 1, 1, 2], [0], [0]>} : vector<4x8x32xbf16>, vector<4x32x8xbf16>, vector<4x8x8xf32> -> vector<4x8x8xf32>
    %c0_33 = arith.constant 0 : index
    %c0_34 = arith.constant 0 : index
    %c0_35 = arith.constant 0 : index
    %c0_36 = arith.constant 0 : index
    %52 = vector.load %arg10[%c0_33, %c0_34, %c0_35, %c0_36] : memref<2x4x1x8xf32, #tpu.memory_space<vmem>>, vector<1x4x1x8xf32>
    %53 = vector.shape_cast %52 : vector<1x4x1x8xf32> to vector<4x1x8xf32>
    %54 = vector.broadcast %53 : vector<4x1x8xf32> to vector<4x8x8xf32>
    %55 = arith.addf %51, %54 : vector<4x8x8xf32>
    %c0_37 = arith.constant 0 : index
    %c0_38 = arith.constant 0 : index
    %c0_39 = arith.constant 0 : index
    %c0_40 = arith.constant 0 : index
    %56 = vector.load %arg11[%c0_37, %c0_38, %c0_39, %c0_40] : memref<2x4x32x8xbf16, #tpu.memory_space<vmem>>, vector<1x4x32x8xbf16>
    %57 = vector.shape_cast %56 : vector<1x4x32x8xbf16> to vector<4x32x8xbf16>
    %cst_41 = arith.constant dense<0.000000e+00> : vector<4x8x8xf32>
    %58 = tpu.matmul %41, %57, %cst_41 {dimension_numbers = #tpu.dot_dimension_numbers<[2], [1], [1], [2], [0, 0, 0, 1, 1, 2], [0], [0]>} : vector<4x8x32xbf16>, vector<4x32x8xbf16>, vector<4x8x8xf32> -> vector<4x8x8xf32>
    %c0_42 = arith.constant 0 : index
    %c0_43 = arith.constant 0 : index
    %c0_44 = arith.constant 0 : index
    %c0_45 = arith.constant 0 : index
    %59 = vector.load %arg12[%c0_42, %c0_43, %c0_44, %c0_45] : memref<2x4x1x8xf32, #tpu.memory_space<vmem>>, vector<1x4x1x8xf32>
    %60 = vector.shape_cast %59 : vector<1x4x1x8xf32> to vector<4x1x8xf32>
    %61 = vector.broadcast %60 : vector<4x1x8xf32> to vector<4x8x8xf32>
    %62 = arith.addf %58, %61 : vector<4x8x8xf32>
    %63 = arith.truncf %48 : vector<4x8x8xf32> to vector<4x8x8xbf16>
    %64 = arith.truncf %55 : vector<4x8x8xf32> to vector<4x8x8xbf16>
    %cst_46 = arith.constant dense<0.000000e+00> : vector<4x8x8xf32>
    %65 = tpu.matmul %63, %64, %cst_46 {dimension_numbers = #tpu.dot_dimension_numbers<[2], [2], [1], [1], [0, 0, 0, 1, 1, 1], [0], [0]>} : vector<4x8x8xbf16>, vector<4x8x8xbf16>, vector<4x8x8xf32> -> vector<4x8x8xf32>
    %cst_47 = arith.constant 0.353553385 : f32
    %66 = vector.broadcast %cst_47 : f32 to vector<4x8x8xf32>
    %67 = arith.mulf %65, %66 : vector<4x8x8xf32>
    %68 = vector.broadcast %38 : vector<1x1x8xf32> to vector<4x8x8xf32>
    %69 = arith.addf %67, %68 : vector<4x8x8xf32>
    %cst_48 = arith.constant dense<0xFF800000> : vector<4x8xf32>
    %70 = vector.multi_reduction <maximumf>, %69, %cst_48 [2] : vector<4x8x8xf32> to vector<4x8xf32>
    %71 = vector.shape_cast %70 : vector<4x8xf32> to vector<4x8x1xf32>
    %72 = vector.broadcast %71 : vector<4x8x1xf32> to vector<4x8x8xf32>
    %73 = arith.subf %69, %72 : vector<4x8x8xf32>
    %74 = math.exp %73 : vector<4x8x8xf32>
    %cst_49 = arith.constant dense<0.000000e+00> : vector<4x8xf32>
    %75 = vector.multi_reduction <add>, %74, %cst_49 [2] : vector<4x8x8xf32> to vector<4x8xf32>
    %76 = vector.shape_cast %75 : vector<4x8xf32> to vector<4x8x1xf32>
    %77 = tpu.reciprocal %76 {approx = true} : vector<4x8x1xf32> -> vector<4x8x1xf32>
    %78 = vector.broadcast %77 : vector<4x8x1xf32> to vector<4x8x8xf32>
    %79 = arith.mulf %74, %78 : vector<4x8x8xf32>
    %80 = arith.truncf %79 : vector<4x8x8xf32> to vector<4x8x8xbf16>
    %81 = arith.truncf %62 : vector<4x8x8xf32> to vector<4x8x8xbf16>
    %cst_50 = arith.constant dense<0.000000e+00> : vector<4x8x8xf32>
    %82 = tpu.matmul %80, %81, %cst_50 {dimension_numbers = #tpu.dot_dimension_numbers<[2], [1], [1], [2], [0, 0, 0, 1, 1, 2], [0], [0]>} : vector<4x8x8xbf16>, vector<4x8x8xbf16>, vector<4x8x8xf32> -> vector<4x8x8xf32>
    %83 = arith.truncf %82 : vector<4x8x8xf32> to vector<4x8x8xbf16>
    %c0_51 = arith.constant 0 : index
    %c0_52 = arith.constant 0 : index
    %c0_53 = arith.constant 0 : index
    %c0_54 = arith.constant 0 : index
    %84 = vector.load %arg13[%c0_51, %c0_52, %c0_53, %c0_54] : memref<2x4x8x32xbf16, #tpu.memory_space<vmem>>, vector<1x4x8x32xbf16>
    %85 = vector.shape_cast %84 : vector<1x4x8x32xbf16> to vector<4x8x32xbf16>
    %cst_55 = arith.constant dense<0.000000e+00> : vector<4x8x32xf32>
    %86 = tpu.matmul %83, %85, %cst_55 {dimension_numbers = #tpu.dot_dimension_numbers<[2], [1], [1], [2], [0, 0, 0, 1, 1, 2], [0], [0]>} : vector<4x8x8xbf16>, vector<4x8x32xbf16>, vector<4x8x32xf32> -> vector<4x8x32xf32>
    %cst_56 = arith.constant dense<0.000000e+00> : vector<8x32xf32>
    %87 = vector.multi_reduction <add>, %86, %cst_56 [0] : vector<4x8x32xf32> to vector<8x32xf32>
    %c0_57 = arith.constant 0 : index
    %c0_58 = arith.constant 0 : index
    %c0_59 = arith.constant 0 : index
    %88 = vector.load %arg14[%c0_57, %c0_58, %c0_59] : memref<2x1x32xf32, #tpu.memory_space<vmem>>, vector<1x1x32xf32>
    %89 = vector.shape_cast %88 : vector<1x1x32xf32> to vector<1x32xf32>
    %90 = vector.broadcast %89 : vector<1x32xf32> to vector<8x32xf32>
    %91 = arith.addf %87, %90 : vector<8x32xf32>
    %92 = arith.addf %91, %30 : vector<8x32xf32>
    %c0_60 = arith.constant 0 : index
    %c0_61 = arith.constant 0 : index
    %c0_62 = arith.constant 0 : index
    %93 = vector.load %arg15[%c0_60, %c0_61, %c0_62] : memref<2x1x32xf32, #tpu.memory_space<vmem>>, vector<1x1x32xf32>
    %94 = vector.shape_cast %93 : vector<1x1x32xf32> to vector<1x32xf32>
    %c0_63 = arith.constant 0 : index
    %c0_64 = arith.constant 0 : index
    %c0_65 = arith.constant 0 : index
    %95 = vector.load %arg16[%c0_63, %c0_64, %c0_65] : memref<2x1x32xf32, #tpu.memory_space<vmem>>, vector<1x1x32xf32>
    %96 = vector.shape_cast %95 : vector<1x1x32xf32> to vector<1x32xf32>
    %cst_66 = arith.constant dense<0.000000e+00> : vector<8xf32>
    %97 = vector.multi_reduction <add>, %92, %cst_66 [1] : vector<8x32xf32> to vector<8xf32>
    %98 = vector.shape_cast %97 : vector<8xf32> to vector<8x1xf32>
    %cst_67 = arith.constant 3.200000e+01 : f32
    %99 = vector.broadcast %cst_67 : f32 to vector<8x1xf32>
    %100 = arith.divf %98, %99 : vector<8x1xf32>
    %101 = vector.broadcast %100 : vector<8x1xf32> to vector<8x32xf32>
    %102 = arith.subf %92, %101 : vector<8x32xf32>
    %103 = arith.mulf %102, %102 : vector<8x32xf32>
    %cst_68 = arith.constant dense<0.000000e+00> : vector<8xf32>
    %104 = vector.multi_reduction <add>, %103, %cst_68 [1] : vector<8x32xf32> to vector<8xf32>
    %105 = vector.shape_cast %104 : vector<8xf32> to vector<8x1xf32>
    %cst_69 = arith.constant 3.200000e+01 : f32
    %106 = vector.broadcast %cst_69 : f32 to vector<8x1xf32>
    %107 = arith.divf %105, %106 : vector<8x1xf32>
    %108 = vector.broadcast %100 : vector<8x1xf32> to vector<8x32xf32>
    %109 = arith.subf %92, %108 : vector<8x32xf32>
    %cst_70 = arith.constant 9.99999996E-13 : f32
    %110 = vector.broadcast %cst_70 : f32 to vector<8x1xf32>
    %111 = arith.addf %107, %110 : vector<8x1xf32>
    %112 = math.rsqrt %111 : vector<8x1xf32>
    %113 = vector.broadcast %112 : vector<8x1xf32> to vector<8x32xf32>
    %114 = arith.mulf %109, %113 : vector<8x32xf32>
    %115 = vector.broadcast %94 : vector<1x32xf32> to vector<8x32xf32>
    %116 = arith.mulf %114, %115 : vector<8x32xf32>
    %117 = vector.broadcast %96 : vector<1x32xf32> to vector<8x32xf32>
    %118 = arith.addf %116, %117 : vector<8x32xf32>
    %119 = arith.truncf %118 : vector<8x32xf32> to vector<8x32xbf16>
    %c0_71 = arith.constant 0 : index
    %c0_72 = arith.constant 0 : index
    %c0_73 = arith.constant 0 : index
    %120 = vector.load %arg17[%c0_71, %c0_72, %c0_73] : memref<2x32x64xbf16, #tpu.memory_space<vmem>>, vector<1x32x64xbf16>
    %121 = vector.shape_cast %120 : vector<1x32x64xbf16> to vector<32x64xbf16>
    %cst_74 = arith.constant dense<0.000000e+00> : vector<8x64xf32>
    %122 = tpu.matmul %119, %121, %cst_74 {dimension_numbers = #tpu.dot_dimension_numbers<[1], [0], [0], [1], [0, 0, 1, 1], [], []>} : vector<8x32xbf16>, vector<32x64xbf16>, vector<8x64xf32> -> vector<8x64xf32>
    %c0_75 = arith.constant 0 : index
    %c0_76 = arith.constant 0 : index
    %c0_77 = arith.constant 0 : index
    %123 = vector.load %arg18[%c0_75, %c0_76, %c0_77] : memref<2x1x64xf32, #tpu.memory_space<vmem>>, vector<1x1x64xf32>
    %124 = vector.shape_cast %123 : vector<1x1x64xf32> to vector<1x64xf32>
    %125 = vector.broadcast %124 : vector<1x64xf32> to vector<8x64xf32>
    %126 = arith.addf %122, %125 : vector<8x64xf32>
    %cst_78 = arith.constant 5.000000e-01 : f32
    %127 = vector.broadcast %cst_78 : f32 to vector<8x64xf32>
    %128 = arith.mulf %127, %126 : vector<8x64xf32>
    %cst_79 = arith.constant 0.707106769 : f32
    %129 = vector.broadcast %cst_79 : f32 to vector<8x64xf32>
    %130 = arith.mulf %126, %129 : vector<8x64xf32>
    %131 = math.erf %130 : vector<8x64xf32>
    %cst_80 = arith.constant 1.000000e+00 : f32
    %132 = vector.broadcast %cst_80 : f32 to vector<8x64xf32>
    %133 = arith.addf %132, %131 : vector<8x64xf32>
    %134 = arith.mulf %128, %133 : vector<8x64xf32>
    %135 = arith.truncf %134 : vector<8x64xf32> to vector<8x64xbf16>
    %c0_81 = arith.constant 0 : index
    %c0_82 = arith.constant 0 : index
    %c0_83 = arith.constant 0 : index
    %136 = vector.load %arg19[%c0_81, %c0_82, %c0_83] : memref<2x64x32xbf16, #tpu.memory_space<vmem>>, vector<1x64x32xbf16>
    %137 = vector.shape_cast %136 : vector<1x64x32xbf16> to vector<64x32xbf16>
    %cst_84 = arith.constant dense<0.000000e+00> : vector<8x32xf32>
    %138 = tpu.matmul %135, %137, %cst_84 {dimension_numbers = #tpu.dot_dimension_numbers<[1], [0], [0], [1], [0, 0, 1, 1], [], []>} : vector<8x64xbf16>, vector<64x32xbf16>, vector<8x32xf32> -> vector<8x32xf32>
    %c0_85 = arith.constant 0 : index
    %c0_86 = arith.constant 0 : index
    %c0_87 = arith.constant 0 : index
    %139 = vector.load %arg20[%c0_85, %c0_86, %c0_87] : memref<2x1x32xf32, #tpu.memory_space<vmem>>, vector<1x1x32xf32>
    %140 = vector.shape_cast %139 : vector<1x1x32xf32> to vector<1x32xf32>
    %141 = vector.broadcast %140 : vector<1x32xf32> to vector<8x32xf32>
    %142 = arith.addf %138, %141 : vector<8x32xf32>
    %143 = arith.addf %142, %118 : vector<8x32xf32>
    %c0_88 = arith.constant 0 : index
    %c0_89 = arith.constant 0 : index
    %c0_90 = arith.constant 0 : index
    %144 = vector.load %arg21[%c0_88, %c0_89, %c0_90] : memref<2x1x32xf32, #tpu.memory_space<vmem>>, vector<1x1x32xf32>
    %145 = vector.shape_cast %144 : vector<1x1x32xf32> to vector<1x32xf32>
    %c0_91 = arith.constant 0 : index
    %c0_92 = arith.constant 0 : index
    %c0_93 = arith.constant 0 : index
    %146 = vector.load %arg22[%c0_91, %c0_92, %c0_93] : memref<2x1x32xf32, #tpu.memory_space<vmem>>, vector<1x1x32xf32>
    %147 = vector.shape_cast %146 : vector<1x1x32xf32> to vector<1x32xf32>
    %cst_94 = arith.constant dense<0.000000e+00> : vector<8xf32>
    %148 = vector.multi_reduction <add>, %143, %cst_94 [1] : vector<8x32xf32> to vector<8xf32>
    %149 = vector.shape_cast %148 : vector<8xf32> to vector<8x1xf32>
    %cst_95 = arith.constant 3.200000e+01 : f32
    %150 = vector.broadcast %cst_95 : f32 to vector<8x1xf32>
    %151 = arith.divf %149, %150 : vector<8x1xf32>
    %152 = vector.broadcast %151 : vector<8x1xf32> to vector<8x32xf32>
    %153 = arith.subf %143, %152 : vector<8x32xf32>
    %154 = arith.mulf %153, %153 : vector<8x32xf32>
    %cst_96 = arith.constant dense<0.000000e+00> : vector<8xf32>
    %155 = vector.multi_reduction <add>, %154, %cst_96 [1] : vector<8x32xf32> to vector<8xf32>
    %156 = vector.shape_cast %155 : vector<8xf32> to vector<8x1xf32>
    %cst_97 = arith.constant 3.200000e+01 : f32
    %157 = vector.broadcast %cst_97 : f32 to vector<8x1xf32>
    %158 = arith.divf %156, %157 : vector<8x1xf32>
    %159 = vector.broadcast %151 : vector<8x1xf32> to vector<8x32xf32>
    %160 = arith.subf %143, %159 : vector<8x32xf32>
    %cst_98 = arith.constant 9.99999996E-13 : f32
    %161 = vector.broadcast %cst_98 : f32 to vector<8x1xf32>
    %162 = arith.addf %158, %161 : vector<8x1xf32>
    %163 = math.rsqrt %162 : vector<8x1xf32>
    %164 = vector.broadcast %163 : vector<8x1xf32> to vector<8x32xf32>
    %165 = arith.mulf %160, %164 : vector<8x32xf32>
    %166 = vector.broadcast %145 : vector<1x32xf32> to vector<8x32xf32>
    %167 = arith.mulf %165, %166 : vector<8x32xf32>
    %168 = vector.broadcast %147 : vector<1x32xf32> to vector<8x32xf32>
    %169 = arith.addf %167, %168 : vector<8x32xf32>
    %170 = arith.truncf %169 : vector<8x32xf32> to vector<8x32xbf16>
    %171 = vector.shape_cast %170 : vector<8x32xbf16> to vector<1x8x32xbf16>
    %172 = vector.broadcast %171 : vector<1x8x32xbf16> to vector<4x8x32xbf16>
    %c1 = arith.constant 1 : index
    %c0_99 = arith.constant 0 : index
    %c0_100 = arith.constant 0 : index
    %c0_101 = arith.constant 0 : index
    %173 = vector.load %arg7[%c1, %c0_99, %c0_100, %c0_101] : memref<2x4x32x8xbf16, #tpu.memory_space<vmem>>, vector<1x4x32x8xbf16>
    %174 = vector.shape_cast %173 : vector<1x4x32x8xbf16> to vector<4x32x8xbf16>
    %cst_102 = arith.constant dense<0.000000e+00> : vector<4x8x8xf32>
    %175 = tpu.matmul %172, %174, %cst_102 {dimension_numbers = #tpu.dot_dimension_numbers<[2], [1], [1], [2], [0, 0, 0, 1, 1, 2], [0], [0]>} : vector<4x8x32xbf16>, vector<4x32x8xbf16>, vector<4x8x8xf32> -> vector<4x8x8xf32>
    %c1_103 = arith.constant 1 : index
    %c0_104 = arith.constant 0 : index
    %c0_105 = arith.constant 0 : index
    %c0_106 = arith.constant 0 : index
    %176 = vector.load %arg8[%c1_103, %c0_104, %c0_105, %c0_106] : memref<2x4x1x8xf32, #tpu.memory_space<vmem>>, vector<1x4x1x8xf32>
    %177 = vector.shape_cast %176 : vector<1x4x1x8xf32> to vector<4x1x8xf32>
    %178 = vector.broadcast %177 : vector<4x1x8xf32> to vector<4x8x8xf32>
    %179 = arith.addf %175, %178 : vector<4x8x8xf32>
    %c1_107 = arith.constant 1 : index
    %c0_108 = arith.constant 0 : index
    %c0_109 = arith.constant 0 : index
    %c0_110 = arith.constant 0 : index
    %180 = vector.load %arg9[%c1_107, %c0_108, %c0_109, %c0_110] : memref<2x4x32x8xbf16, #tpu.memory_space<vmem>>, vector<1x4x32x8xbf16>
    %181 = vector.shape_cast %180 : vector<1x4x32x8xbf16> to vector<4x32x8xbf16>
    %cst_111 = arith.constant dense<0.000000e+00> : vector<4x8x8xf32>
    %182 = tpu.matmul %172, %181, %cst_111 {dimension_numbers = #tpu.dot_dimension_numbers<[2], [1], [1], [2], [0, 0, 0, 1, 1, 2], [0], [0]>} : vector<4x8x32xbf16>, vector<4x32x8xbf16>, vector<4x8x8xf32> -> vector<4x8x8xf32>
    %c1_112 = arith.constant 1 : index
    %c0_113 = arith.constant 0 : index
    %c0_114 = arith.constant 0 : index
    %c0_115 = arith.constant 0 : index
    %183 = vector.load %arg10[%c1_112, %c0_113, %c0_114, %c0_115] : memref<2x4x1x8xf32, #tpu.memory_space<vmem>>, vector<1x4x1x8xf32>
    %184 = vector.shape_cast %183 : vector<1x4x1x8xf32> to vector<4x1x8xf32>
    %185 = vector.broadcast %184 : vector<4x1x8xf32> to vector<4x8x8xf32>
    %186 = arith.addf %182, %185 : vector<4x8x8xf32>
    %c1_116 = arith.constant 1 : index
    %c0_117 = arith.constant 0 : index
    %c0_118 = arith.constant 0 : index
    %c0_119 = arith.constant 0 : index
    %187 = vector.load %arg11[%c1_116, %c0_117, %c0_118, %c0_119] : memref<2x4x32x8xbf16, #tpu.memory_space<vmem>>, vector<1x4x32x8xbf16>
    %188 = vector.shape_cast %187 : vector<1x4x32x8xbf16> to vector<4x32x8xbf16>
    %cst_120 = arith.constant dense<0.000000e+00> : vector<4x8x8xf32>
    %189 = tpu.matmul %172, %188, %cst_120 {dimension_numbers = #tpu.dot_dimension_numbers<[2], [1], [1], [2], [0, 0, 0, 1, 1, 2], [0], [0]>} : vector<4x8x32xbf16>, vector<4x32x8xbf16>, vector<4x8x8xf32> -> vector<4x8x8xf32>
    %c1_121 = arith.constant 1 : index
    %c0_122 = arith.constant 0 : index
    %c0_123 = arith.constant 0 : index
    %c0_124 = arith.constant 0 : index
    %190 = vector.load %arg12[%c1_121, %c0_122, %c0_123, %c0_124] : memref<2x4x1x8xf32, #tpu.memory_space<vmem>>, vector<1x4x1x8xf32>
    %191 = vector.shape_cast %190 : vector<1x4x1x8xf32> to vector<4x1x8xf32>
    %192 = vector.broadcast %191 : vector<4x1x8xf32> to vector<4x8x8xf32>
    %193 = arith.addf %189, %192 : vector<4x8x8xf32>
    %194 = arith.truncf %179 : vector<4x8x8xf32> to vector<4x8x8xbf16>
    %195 = arith.truncf %186 : vector<4x8x8xf32> to vector<4x8x8xbf16>
    %cst_125 = arith.constant dense<0.000000e+00> : vector<4x8x8xf32>
    %196 = tpu.matmul %194, %195, %cst_125 {dimension_numbers = #tpu.dot_dimension_numbers<[2], [2], [1], [1], [0, 0, 0, 1, 1, 1], [0], [0]>} : vector<4x8x8xbf16>, vector<4x8x8xbf16>, vector<4x8x8xf32> -> vector<4x8x8xf32>
    %cst_126 = arith.constant 0.353553385 : f32
    %197 = vector.broadcast %cst_126 : f32 to vector<4x8x8xf32>
    %198 = arith.mulf %196, %197 : vector<4x8x8xf32>
    %199 = vector.broadcast %38 : vector<1x1x8xf32> to vector<4x8x8xf32>
    %200 = arith.addf %198, %199 : vector<4x8x8xf32>
    %cst_127 = arith.constant dense<0xFF800000> : vector<4x8xf32>
    %201 = vector.multi_reduction <maximumf>, %200, %cst_127 [2] : vector<4x8x8xf32> to vector<4x8xf32>
    %202 = vector.shape_cast %201 : vector<4x8xf32> to vector<4x8x1xf32>
    %203 = vector.broadcast %202 : vector<4x8x1xf32> to vector<4x8x8xf32>
    %204 = arith.subf %200, %203 : vector<4x8x8xf32>
    %205 = math.exp %204 : vector<4x8x8xf32>
    %cst_128 = arith.constant dense<0.000000e+00> : vector<4x8xf32>
    %206 = vector.multi_reduction <add>, %205, %cst_128 [2] : vector<4x8x8xf32> to vector<4x8xf32>
    %207 = vector.shape_cast %206 : vector<4x8xf32> to vector<4x8x1xf32>
    %208 = tpu.reciprocal %207 {approx = true} : vector<4x8x1xf32> -> vector<4x8x1xf32>
    %209 = vector.broadcast %208 : vector<4x8x1xf32> to vector<4x8x8xf32>
    %210 = arith.mulf %205, %209 : vector<4x8x8xf32>
    %211 = arith.truncf %210 : vector<4x8x8xf32> to vector<4x8x8xbf16>
    %212 = arith.truncf %193 : vector<4x8x8xf32> to vector<4x8x8xbf16>
    %cst_129 = arith.constant dense<0.000000e+00> : vector<4x8x8xf32>
    %213 = tpu.matmul %211, %212, %cst_129 {dimension_numbers = #tpu.dot_dimension_numbers<[2], [1], [1], [2], [0, 0, 0, 1, 1, 2], [0], [0]>} : vector<4x8x8xbf16>, vector<4x8x8xbf16>, vector<4x8x8xf32> -> vector<4x8x8xf32>
    %214 = arith.truncf %213 : vector<4x8x8xf32> to vector<4x8x8xbf16>
    %c1_130 = arith.constant 1 : index
    %c0_131 = arith.constant 0 : index
    %c0_132 = arith.constant 0 : index
    %c0_133 = arith.constant 0 : index
    %215 = vector.load %arg13[%c1_130, %c0_131, %c0_132, %c0_133] : memref<2x4x8x32xbf16, #tpu.memory_space<vmem>>, vector<1x4x8x32xbf16>
    %216 = vector.shape_cast %215 : vector<1x4x8x32xbf16> to vector<4x8x32xbf16>
    %cst_134 = arith.constant dense<0.000000e+00> : vector<4x8x32xf32>
    %217 = tpu.matmul %214, %216, %cst_134 {dimension_numbers = #tpu.dot_dimension_numbers<[2], [1], [1], [2], [0, 0, 0, 1, 1, 2], [0], [0]>} : vector<4x8x8xbf16>, vector<4x8x32xbf16>, vector<4x8x32xf32> -> vector<4x8x32xf32>
    %cst_135 = arith.constant dense<0.000000e+00> : vector<8x32xf32>
    %218 = vector.multi_reduction <add>, %217, %cst_135 [0] : vector<4x8x32xf32> to vector<8x32xf32>
    %c1_136 = arith.constant 1 : index
    %c0_137 = arith.constant 0 : index
    %c0_138 = arith.constant 0 : index
    %219 = vector.load %arg14[%c1_136, %c0_137, %c0_138] : memref<2x1x32xf32, #tpu.memory_space<vmem>>, vector<1x1x32xf32>
    %220 = vector.shape_cast %219 : vector<1x1x32xf32> to vector<1x32xf32>
    %221 = vector.broadcast %220 : vector<1x32xf32> to vector<8x32xf32>
    %222 = arith.addf %218, %221 : vector<8x32xf32>
    %223 = arith.addf %222, %169 : vector<8x32xf32>
    %c1_139 = arith.constant 1 : index
    %c0_140 = arith.constant 0 : index
    %c0_141 = arith.constant 0 : index
    %224 = vector.load %arg15[%c1_139, %c0_140, %c0_141] : memref<2x1x32xf32, #tpu.memory_space<vmem>>, vector<1x1x32xf32>
    %225 = vector.shape_cast %224 : vector<1x1x32xf32> to vector<1x32xf32>
    %c1_142 = arith.constant 1 : index
    %c0_143 = arith.constant 0 : index
    %c0_144 = arith.constant 0 : index
    %226 = vector.load %arg16[%c1_142, %c0_143, %c0_144] : memref<2x1x32xf32, #tpu.memory_space<vmem>>, vector<1x1x32xf32>
    %227 = vector.shape_cast %226 : vector<1x1x32xf32> to vector<1x32xf32>
    %cst_145 = arith.constant dense<0.000000e+00> : vector<8xf32>
    %228 = vector.multi_reduction <add>, %223, %cst_145 [1] : vector<8x32xf32> to vector<8xf32>
    %229 = vector.shape_cast %228 : vector<8xf32> to vector<8x1xf32>
    %cst_146 = arith.constant 3.200000e+01 : f32
    %230 = vector.broadcast %cst_146 : f32 to vector<8x1xf32>
    %231 = arith.divf %229, %230 : vector<8x1xf32>
    %232 = vector.broadcast %231 : vector<8x1xf32> to vector<8x32xf32>
    %233 = arith.subf %223, %232 : vector<8x32xf32>
    %234 = arith.mulf %233, %233 : vector<8x32xf32>
    %cst_147 = arith.constant dense<0.000000e+00> : vector<8xf32>
    %235 = vector.multi_reduction <add>, %234, %cst_147 [1] : vector<8x32xf32> to vector<8xf32>
    %236 = vector.shape_cast %235 : vector<8xf32> to vector<8x1xf32>
    %cst_148 = arith.constant 3.200000e+01 : f32
    %237 = vector.broadcast %cst_148 : f32 to vector<8x1xf32>
    %238 = arith.divf %236, %237 : vector<8x1xf32>
    %239 = vector.broadcast %231 : vector<8x1xf32> to vector<8x32xf32>
    %240 = arith.subf %223, %239 : vector<8x32xf32>
    %cst_149 = arith.constant 9.99999996E-13 : f32
    %241 = vector.broadcast %cst_149 : f32 to vector<8x1xf32>
    %242 = arith.addf %238, %241 : vector<8x1xf32>
    %243 = math.rsqrt %242 : vector<8x1xf32>
    %244 = vector.broadcast %243 : vector<8x1xf32> to vector<8x32xf32>
    %245 = arith.mulf %240, %244 : vector<8x32xf32>
    %246 = vector.broadcast %225 : vector<1x32xf32> to vector<8x32xf32>
    %247 = arith.mulf %245, %246 : vector<8x32xf32>
    %248 = vector.broadcast %227 : vector<1x32xf32> to vector<8x32xf32>
    %249 = arith.addf %247, %248 : vector<8x32xf32>
    %250 = arith.truncf %249 : vector<8x32xf32> to vector<8x32xbf16>
    %c1_150 = arith.constant 1 : index
    %c0_151 = arith.constant 0 : index
    %c0_152 = arith.constant 0 : index
    %251 = vector.load %arg17[%c1_150, %c0_151, %c0_152] : memref<2x32x64xbf16, #tpu.memory_space<vmem>>, vector<1x32x64xbf16>
    %252 = vector.shape_cast %251 : vector<1x32x64xbf16> to vector<32x64xbf16>
    %cst_153 = arith.constant dense<0.000000e+00> : vector<8x64xf32>
    %253 = tpu.matmul %250, %252, %cst_153 {dimension_numbers = #tpu.dot_dimension_numbers<[1], [0], [0], [1], [0, 0, 1, 1], [], []>} : vector<8x32xbf16>, vector<32x64xbf16>, vector<8x64xf32> -> vector<8x64xf32>
    %c1_154 = arith.constant 1 : index
    %c0_155 = arith.constant 0 : index
    %c0_156 = arith.constant 0 : index
    %254 = vector.load %arg18[%c1_154, %c0_155, %c0_156] : memref<2x1x64xf32, #tpu.memory_space<vmem>>, vector<1x1x64xf32>
    %255 = vector.shape_cast %254 : vector<1x1x64xf32> to vector<1x64xf32>
    %256 = vector.broadcast %255 : vector<1x64xf32> to vector<8x64xf32>
    %257 = arith.addf %253, %256 : vector<8x64xf32>
    %cst_157 = arith.constant 5.000000e-01 : f32
    %258 = vector.broadcast %cst_157 : f32 to vector<8x64xf32>
    %259 = arith.mulf %258, %257 : vector<8x64xf32>
    %cst_158 = arith.constant 0.707106769 : f32
    %260 = vector.broadcast %cst_158 : f32 to vector<8x64xf32>
    %261 = arith.mulf %257, %260 : vector<8x64xf32>
    %262 = math.erf %261 : vector<8x64xf32>
    %cst_159 = arith.constant 1.000000e+00 : f32
    %263 = vector.broadcast %cst_159 : f32 to vector<8x64xf32>
    %264 = arith.addf %263, %262 : vector<8x64xf32>
    %265 = arith.mulf %259, %264 : vector<8x64xf32>
    %266 = arith.truncf %265 : vector<8x64xf32> to vector<8x64xbf16>
    %c1_160 = arith.constant 1 : index
    %c0_161 = arith.constant 0 : index
    %c0_162 = arith.constant 0 : index
    %267 = vector.load %arg19[%c1_160, %c0_161, %c0_162] : memref<2x64x32xbf16, #tpu.memory_space<vmem>>, vector<1x64x32xbf16>
    %268 = vector.shape_cast %267 : vector<1x64x32xbf16> to vector<64x32xbf16>
    %cst_163 = arith.constant dense<0.000000e+00> : vector<8x32xf32>
    %269 = tpu.matmul %266, %268, %cst_163 {dimension_numbers = #tpu.dot_dimension_numbers<[1], [0], [0], [1], [0, 0, 1, 1], [], []>} : vector<8x64xbf16>, vector<64x32xbf16>, vector<8x32xf32> -> vector<8x32xf32>
    %c1_164 = arith.constant 1 : index
    %c0_165 = arith.constant 0 : index
    %c0_166 = arith.constant 0 : index
    %270 = vector.load %arg20[%c1_164, %c0_165, %c0_166] : memref<2x1x32xf32, #tpu.memory_space<vmem>>, vector<1x1x32xf32>
    %271 = vector.shape_cast %270 : vector<1x1x32xf32> to vector<1x32xf32>
    %272 = vector.broadcast %271 : vector<1x32xf32> to vector<8x32xf32>
    %273 = arith.addf %269, %272 : vector<8x32xf32>
    %274 = arith.addf %273, %249 : vector<8x32xf32>
    %c1_167 = arith.constant 1 : index
    %c0_168 = arith.constant 0 : index
    %c0_169 = arith.constant 0 : index
    %275 = vector.load %arg21[%c1_167, %c0_168, %c0_169] : memref<2x1x32xf32, #tpu.memory_space<vmem>>, vector<1x1x32xf32>
    %276 = vector.shape_cast %275 : vector<1x1x32xf32> to vector<1x32xf32>
    %c1_170 = arith.constant 1 : index
    %c0_171 = arith.constant 0 : index
    %c0_172 = arith.constant 0 : index
    %277 = vector.load %arg22[%c1_170, %c0_171, %c0_172] : memref<2x1x32xf32, #tpu.memory_space<vmem>>, vector<1x1x32xf32>
    %278 = vector.shape_cast %277 : vector<1x1x32xf32> to vector<1x32xf32>
    %cst_173 = arith.constant dense<0.000000e+00> : vector<8xf32>
    %279 = vector.multi_reduction <add>, %274, %cst_173 [1] : vector<8x32xf32> to vector<8xf32>
    %280 = vector.shape_cast %279 : vector<8xf32> to vector<8x1xf32>
    %cst_174 = arith.constant 3.200000e+01 : f32
    %281 = vector.broadcast %cst_174 : f32 to vector<8x1xf32>
    %282 = arith.divf %280, %281 : vector<8x1xf32>
    %283 = vector.broadcast %282 : vector<8x1xf32> to vector<8x32xf32>
    %284 = arith.subf %274, %283 : vector<8x32xf32>
    %285 = arith.mulf %284, %284 : vector<8x32xf32>
    %cst_175 = arith.constant dense<0.000000e+00> : vector<8xf32>
    %286 = vector.multi_reduction <add>, %285, %cst_175 [1] : vector<8x32xf32> to vector<8xf32>
    %287 = vector.shape_cast %286 : vector<8xf32> to vector<8x1xf32>
    %cst_176 = arith.constant 3.200000e+01 : f32
    %288 = vector.broadcast %cst_176 : f32 to vector<8x1xf32>
    %289 = arith.divf %287, %288 : vector<8x1xf32>
    %290 = vector.broadcast %282 : vector<8x1xf32> to vector<8x32xf32>
    %291 = arith.subf %274, %290 : vector<8x32xf32>
    %cst_177 = arith.constant 9.99999996E-13 : f32
    %292 = vector.broadcast %cst_177 : f32 to vector<8x1xf32>
    %293 = arith.addf %289, %292 : vector<8x1xf32>
    %294 = math.rsqrt %293 : vector<8x1xf32>
    %295 = vector.broadcast %294 : vector<8x1xf32> to vector<8x32xf32>
    %296 = arith.mulf %291, %295 : vector<8x32xf32>
    %297 = vector.broadcast %276 : vector<1x32xf32> to vector<8x32xf32>
    %298 = arith.mulf %296, %297 : vector<8x32xf32>
    %299 = vector.broadcast %278 : vector<1x32xf32> to vector<8x32xf32>
    %300 = arith.addf %298, %299 : vector<8x32xf32>
    %301 = vector.extract_strided_slice %300 {offsets = [0, 0], sizes = [1, 32], strides = [1, 1]} : vector<8x32xf32> to vector<1x32xf32>
    %302 = arith.truncf %301 : vector<1x32xf32> to vector<1x32xbf16>
    %c0_178 = arith.constant 0 : index
    %c0_179 = arith.constant 0 : index
    %303 = vector.load %arg23[%c0_178, %c0_179] : memref<32x32xbf16, #tpu.memory_space<vmem>>, vector<32x32xbf16>
    %cst_180 = arith.constant dense<0.000000e+00> : vector<1x32xf32>
    %304 = tpu.matmul %302, %303, %cst_180 {dimension_numbers = #tpu.dot_dimension_numbers<[1], [0], [0], [1], [0, 0, 1, 1], [], []>} : vector<1x32xbf16>, vector<32x32xbf16>, vector<1x32xf32> -> vector<1x32xf32>
    %c0_181 = arith.constant 0 : index
    %c0_182 = arith.constant 0 : index
    %305 = vector.load %arg24[%c0_181, %c0_182] : memref<1x32xf32, #tpu.memory_space<vmem>>, vector<1x32xf32>
    %306 = arith.addf %304, %305 : vector<1x32xf32>
    %307 = math.tanh %306 : vector<1x32xf32>
    %308 = arith.truncf %307 : vector<1x32xf32> to vector<1x32xbf16>
    %c0_183 = arith.constant 0 : index
    %c0_184 = arith.constant 0 : index
    %309 = vector.load %arg25[%c0_183, %c0_184] : memref<32x16xbf16, #tpu.memory_space<vmem>>, vector<32x16xbf16>
    %cst_185 = arith.constant dense<0.000000e+00> : vector<1x16xf32>
    %310 = tpu.matmul %308, %309, %cst_185 {dimension_numbers = #tpu.dot_dimension_numbers<[1], [0], [0], [1], [0, 0, 1, 1], [], []>} : vector<1x32xbf16>, vector<32x16xbf16>, vector<1x16xf32> -> vector<1x16xf32>
    %c0_186 = arith.constant 0 : index
    %c0_187 = arith.constant 0 : index
    %311 = vector.load %arg26[%c0_186, %c0_187] : memref<1x16xf32, #tpu.memory_space<vmem>>, vector<1x16xf32>
    %312 = arith.addf %310, %311 : vector<1x16xf32>
    %c0_188 = arith.constant 0 : index
    %c0_189 = arith.constant 0 : index
    %c0_190 = arith.constant 0 : index
    %313 = vector.load %arg27[%c0_188, %c0_189, %c0_190] : memref<1x1x16xf32, #tpu.memory_space<vmem>>, vector<1x1x16xf32>
    %314 = vector.shape_cast %313 : vector<1x1x16xf32> to vector<1x16xf32>
    %315 = vector.shape_cast %312 : vector<1x16xf32> to vector<1x1x16xf32>
    tpu.vector_store %arg27[%c0_188, %c0_189, %c0_190], %315 {strides = array<i32>} : memref<1x1x16xf32, #tpu.memory_space<vmem>>, vector<1x1x16xf32>,
    return
  }
  func.func @transform_0(%arg0: i32) -> (i32, i32, i32) {
    %c0_i32 = arith.constant 0 : i32
    %c0_i32_0 = arith.constant 0 : i32
    %c0_i32_1 = arith.constant 0 : i32
    return %arg0, %c0_i32, %c0_i32_0 : i32, i32, i32
  }
  func.func @transform_1(%arg0: i32) -> (i32, i32, i32) {
    %c0_i32 = arith.constant 0 : i32
    %c0_i32_0 = arith.constant 0 : i32
    %c0_i32_1 = arith.constant 0 : i32
    return %arg0, %c0_i32, %c0_i32_0 : i32, i32, i32
  }
  func.func @transform_2(%arg0: i32) -> (i32, i32) {
    %c0_i32 = arith.constant 0 : i32
    %c0_i32_0 = arith.constant 0 : i32
    %c0_i32_1 = arith.constant 0 : i32
    return %c0_i32, %c0_i32_0 : i32, i32
  }
  func.func @transform_3(%arg0: i32) -> (i32, i32) {
    %c0_i32 = arith.constant 0 : i32
    %c0_i32_0 = arith.constant 0 : i32
    %c0_i32_1 = arith.constant 0 : i32
    return %c0_i32, %c0_i32_0 : i32, i32
  }
  func.func @transform_4(%arg0: i32) -> (i32, i32) {
    %c0_i32 = arith.constant 0 : i32
    %c0_i32_0 = arith.constant 0 : i32
    %c0_i32_1 = arith.constant 0 : i32
    return %c0_i32, %c0_i32_0 : i32, i32
  }
  func.func @transform_5(%arg0: i32) -> (i32, i32) {
    %c0_i32 = arith.constant 0 : i32
    %c0_i32_0 = arith.constant 0 : i32
    %c0_i32_1 = arith.constant 0 : i32
    return %c0_i32, %c0_i32_0 : i32, i32
  }
  func.func @transform_6(%arg0: i32) -> (i32, i32, i32, i32) {
    %c0_i32 = arith.constant 0 : i32
    %c0_i32_0 = arith.constant 0 : i32
    %c0_i32_1 = arith.constant 0 : i32
    %c0_i32_2 = arith.constant 0 : i32
    %c0_i32_3 = arith.constant 0 : i32
    return %c0_i32, %c0_i32_0, %c0_i32_1, %c0_i32_2 : i32, i32, i32, i32
  }
  func.func @transform_7(%arg0: i32) -> (i32, i32, i32, i32) {
    %c0_i32 = arith.constant 0 : i32
    %c0_i32_0 = arith.constant 0 : i32
    %c0_i32_1 = arith.constant 0 : i32
    %c0_i32_2 = arith.constant 0 : i32
    %c0_i32_3 = arith.constant 0 : i32
    return %c0_i32, %c0_i32_0, %c0_i32_1, %c0_i32_2 : i32, i32, i32, i32
  }
  func.func @transform_8(%arg0: i32) -> (i32, i32, i32, i32) {
    %c0_i32 = arith.constant 0 : i32
    %c0_i32_0 = arith.constant 0 : i32
    %c0_i32_1 = arith.constant 0 : i32
    %c0_i32_2 = arith.constant 0 : i32
    %c0_i32_3 = arith.constant 0 : i32
    return %c0_i32, %c0_i32_0, %c0_i32_1, %c0_i32_2 : i32, i32, i32, i32
  }
  func.func @transform_9(%arg0: i32) -> (i32, i32, i32, i32) {
    %c0_i32 = arith.constant 0 : i32
    %c0_i32_0 = arith.constant 0 : i32
    %c0_i32_1 = arith.constant 0 : i32
    %c0_i32_2 = arith.constant 0 : i32
    %c0_i32_3 = arith.constant 0 : i32
    return %c0_i32, %c0_i32_0, %c0_i32_1, %c0_i32_2 : i32, i32, i32, i32
  }
  func.func @transform_10(%arg0: i32) -> (i32, i32, i32, i32) {
    %c0_i32 = arith.constant 0 : i32
    %c0_i32_0 = arith.constant 0 : i32
    %c0_i32_1 = arith.constant 0 : i32
    %c0_i32_2 = arith.constant 0 : i32
    %c0_i32_3 = arith.constant 0 : i32
    return %c0_i32, %c0_i32_0, %c0_i32_1, %c0_i32_2 : i32, i32, i32, i32
  }
  func.func @transform_11(%arg0: i32) -> (i32, i32, i32, i32) {
    %c0_i32 = arith.constant 0 : i32
    %c0_i32_0 = arith.constant 0 : i32
    %c0_i32_1 = arith.constant 0 : i32
    %c0_i32_2 = arith.constant 0 : i32
    %c0_i32_3 = arith.constant 0 : i32
    return %c0_i32, %c0_i32_0, %c0_i32_1, %c0_i32_2 : i32, i32, i32, i32
  }
  func.func @transform_12(%arg0: i32) -> (i32, i32, i32, i32) {
    %c0_i32 = arith.constant 0 : i32
    %c0_i32_0 = arith.constant 0 : i32
    %c0_i32_1 = arith.constant 0 : i32
    %c0_i32_2 = arith.constant 0 : i32
    %c0_i32_3 = arith.constant 0 : i32
    return %c0_i32, %c0_i32_0, %c0_i32_1, %c0_i32_2 : i32, i32, i32, i32
  }
  func.func @transform_13(%arg0: i32) -> (i32, i32, i32) {
    %c0_i32 = arith.constant 0 : i32
    %c0_i32_0 = arith.constant 0 : i32
    %c0_i32_1 = arith.constant 0 : i32
    %c0_i32_2 = arith.constant 0 : i32
    return %c0_i32, %c0_i32_0, %c0_i32_1 : i32, i32, i32
  }
  func.func @transform_14(%arg0: i32) -> (i32, i32, i32) {
    %c0_i32 = arith.constant 0 : i32
    %c0_i32_0 = arith.constant 0 : i32
    %c0_i32_1 = arith.constant 0 : i32
    %c0_i32_2 = arith.constant 0 : i32
    return %c0_i32, %c0_i32_0, %c0_i32_1 : i32, i32, i32
  }
  func.func @transform_15(%arg0: i32) -> (i32, i32, i32) {
    %c0_i32 = arith.constant 0 : i32
    %c0_i32_0 = arith.constant 0 : i32
    %c0_i32_1 = arith.constant 0 : i32
    %c0_i32_2 = arith.constant 0 : i32
    return %c0_i32, %c0_i32_0, %c0_i32_1 : i32, i32, i32
  }
  func.func @transform_16(%arg0: i32) -> (i32, i32, i32) {
    %c0_i32 = arith.constant 0 : i32
    %c0_i32_0 = arith.constant 0 : i32
    %c0_i32_1 = arith.constant 0 : i32
    %c0_i32_2 = arith.constant 0 : i32
    return %c0_i32, %c0_i32_0, %c0_i32_1 : i32, i32, i32
  }
  func.func @transform_17(%arg0: i32) -> (i32, i32, i32) {
    %c0_i32 = arith.constant 0 : i32
    %c0_i32_0 = arith.constant 0 : i32
    %c0_i32_1 = arith.constant 0 : i32
    %c0_i32_2 = arith.constant 0 : i32
    return %c0_i32, %c0_i32_0, %c0_i32_1 : i32, i32, i32
  }
  func.func @transform_18(%arg0: i32) -> (i32, i32, i32) {
    %c0_i32 = arith.constant 0 : i32
    %c0_i32_0 = arith.constant 0 : i32
    %c0_i32_1 = arith.constant 0 : i32
    %c0_i32_2 = arith.constant 0 : i32
    return %c0_i32, %c0_i32_0, %c0_i32_1 : i32, i32, i32
  }
  func.func @transform_19(%arg0: i32) -> (i32, i32, i32) {
    %c0_i32 = arith.constant 0 : i32
    %c0_i32_0 = arith.constant 0 : i32
    %c0_i32_1 = arith.constant 0 : i32
    %c0_i32_2 = arith.constant 0 : i32
    return %c0_i32, %c0_i32_0, %c0_i32_1 : i32, i32, i32
  }
  func.func @transform_20(%arg0: i32) -> (i32, i32, i32) {
    %c0_i32 = arith.constant 0 : i32
    %c0_i32_0 = arith.constant 0 : i32
    %c0_i32_1 = arith.constant 0 : i32
    %c0_i32_2 = arith.constant 0 : i32
    return %c0_i32, %c0_i32_0, %c0_i32_1 : i32, i32, i32
  }
  func.func @transform_21(%arg0: i32) -> (i32, i32, i32) {
    %c0_i32 = arith.constant 0 : i32
    %c0_i32_0 = arith.constant 0 : i32
    %c0_i32_1 = arith.constant 0 : i32
    %c0_i32_2 = arith.constant 0 : i32
    return %c0_i32, %c0_i32_0, %c0_i32_1 : i32, i32, i32
  }
  func.func @transform_22(%arg0: i32) -> (i32, i32) {
    %c0_i32 = arith.constant 0 : i32
    %c0_i32_0 = arith.constant 0 : i32
    %c0_i32_1 = arith.constant 0 : i32
    return %c0_i32, %c0_i32_0 : i32, i32
  }
  func.func @transform_23(%arg0: i32) -> (i32, i32) {
    %c0_i32 = arith.constant 0 : i32
    %c0_i32_0 = arith.constant 0 : i32
    %c0_i32_1 = arith.constant 0 : i32
    return %c0_i32, %c0_i32_0 : i32, i32
  }
  func.func @transform_24(%arg0: i32) -> (i32, i32) {
    %c0_i32 = arith.constant 0 : i32
    %c0_i32_0 = arith.constant 0 : i32
    %c0_i32_1 = arith.constant 0 : i32
    return %c0_i32, %c0_i32_0 : i32, i32
  }
  func.func @transform_25(%arg0: i32) -> (i32, i32) {
    %c0_i32 = arith.constant 0 : i32
    %c0_i32_0 = arith.constant 0 : i32
    %c0_i32_1 = arith.constant 0 : i32
    return %c0_i32, %c0_i32_0 : i32, i32
  }
  func.func @transform_26(%arg0: i32) -> (i32, i32, i32) {
    %c0_i32 = arith.constant 0 : i32
    %c0_i32_0 = arith.constant 0 : i32
    %c0_i32_1 = arith.constant 0 : i32
    return %arg0, %c0_i32, %c0_i32_0 : i32, i32, i32
  }
}

</mosaic_0001>

<bundles_post_ra>
// kernel: bash_ai_forward.1
= control target key start
LH: loop header
LB: loop body
LE: loop exit
PB: predicated region body
PF: predicated region fallthrough
CT: control target
= control target key end

     0   :  { %s6272_s0 = inlined_call_operand.vmem [shape: s32[2,1,8], index: 0, kind: input, shape index: {}]   ;;  %s6273_s1 = inlined_call_operand.vmem [shape: f32[2,8,32], index: 1, kind: input, shape index: {}]   ;;  %s6274_s2 = inlined_call_operand.vmem [shape: f32[8,32], index: 2, kind: input, shape index: {}]   ;;  %s6275_s3 = inlined_call_operand.vmem [shape: f32[1,32], index: 3, kind: input, shape index: {}]   ;;  %s6276_s4 = inlined_call_operand.vmem [shape: f32[1,32], index: 4, kind: input, shape index: {}]   ;;  %s6277_s5 = inlined_call_operand.vmem [shape: f32[1,32], index: 5, kind: input, shape index: {}]   ;;  %s6278_s6 = inlined_call_operand.vmem [shape: bf16[2,4,32,8], index: 6, kind: input, shape index: {}]   ;;  %s6279_s7 = inlined_call_operand.vmem [shape: f32[2,4,1,8], index: 7, kind: input, shape index: {}]   ;;  %s6280_s8 = inlined_call_operand.vmem [shape: bf16[2,4,32,8], index: 8, kind: input, shape index: {}]   ;;  %s6281_s9 = inlined_call_operand.vmem [shape: f32[2,4,1,8], index: 9, kind: input, shape index: {}]   ;;  %s6282_s10 = inlined_call_operand.vmem [shape: bf16[2,4,32,8], index: 10, kind: input, shape index: {}]   ;;  %s6283_s11 = inlined_call_operand.vmem [shape: f32[2,4,1,8], index: 11, kind: input, shape index: {}]   ;;  %s6284_s12 = inlined_call_operand.vmem [shape: bf16[2,4,8,32], index: 12, kind: input, shape index: {}]   ;;  %s6285_s13 = inlined_call_operand.vmem [shape: f32[2,1,32], index: 13, kind: input, shape index: {}]   ;;  %s6286_s14 = inlined_call_operand.vmem [shape: f32[2,1,32], index: 14, kind: input, shape index: {}]   ;;  %s6287_s15 = inlined_call_operand.vmem [shape: f32[2,1,32], index: 15, kind: input, shape index: {}]   ;;  %s6288_s16 = inlined_call_operand.vmem [shape: bf16[2,32,64], index: 16, kind: input, shape index: {}]   ;;  %s6289_s17 = inlined_call_operand.vmem [shape: f32[2,1,64], index: 17, kind: input, shape index: {}]   ;;  %s6290_s18 = inlined_call_operand.vmem [shape: bf16[2,64,32], index: 18, kind: input, shape index: {}]   ;;  %s6291_s19 = inlined_call_operand.vmem [shape: f32[2,1,32], index: 19, kind: input, shape index: {}]   ;;  %s6292_s20 = inlined_call_operand.vmem [shape: f32[2,1,32], index: 20, kind: input, shape index: {}]   ;;  %s6293_s21 = inlined_call_operand.vmem [shape: f32[2,1,32], index: 21, kind: input, shape index: {}]   ;;  %s6294_s22 = inlined_call_operand.vmem [shape: bf16[32,32], index: 22, kind: input, shape index: {}]   ;;  %s6295_s23 = inlined_call_operand.vmem [shape: f32[1,32], index: 23, kind: input, shape index: {}]   ;;  %s6296_s24 = inlined_call_operand.vmem [shape: bf16[32,16], index: 24, kind: input, shape index: {}]   ;;  %s6297_s25 = inlined_call_operand.vmem [shape: f32[1,16], index: 25, kind: input, shape index: {}]   ;;  %s6298_s26 = inlined_call_operand.hbm [shape: f32[2,1,16], index: 26, kind: output, shape index: {}]  }
   0x1   :  { %6315 = sst [smem:[#allocation12_spill]] %s6272_s0 }
   0x2   :  { %6316 = sst [smem:[#allocation13_spill]] %s6273_s1 }
   0x3   :  { %6317 = sst [smem:[#allocation14_spill]] %s6274_s2 }
   0x4   :  { %6318 = sst [smem:[#allocation15_spill]] %s6275_s3 }
   0x5   :  { %6319 = sst [smem:[#allocation16_spill]] %s6276_s4 }
   0x6   :  { %6320 = sst [smem:[#allocation17_spill]] %s6277_s5 }
   0x7   :  { %6321 = sst [smem:[#allocation18_spill]] %s6278_s6 }
   0x8   :  { %6322 = sst [smem:[#allocation19_spill]] %s6279_s7 }
   0x9   :  { %6323 = sst [smem:[#allocation20_spill]] %s6280_s8 }
   0xa   :  { %6324 = sst [smem:[#allocation21_spill]] %s6281_s9 }
   0xb   :  { %6325 = sst [smem:[#allocation22_spill]] %s6282_s10 }
   0xc   :  { %6326 = sst [smem:[#allocation23_spill]] %s6297_s25 }
   0xd   :  { %6327 = sst [smem:[#allocation24_spill]] %s6298_s26 }
   0xe   :  { %31 = vsyncpa [#allocation3], 0 }
   0xf   :  { %33 = vsyncpa [#allocation3 + $0x1], 0  ;;  %s5449_s27 = smov 0   ;;  %s5451_s3 = smov 0  }
  0x10   :  { %s5453_s7 = smov 0   ;;  %s5455_s28 = smov 0  }
  0x11 LB: > { %6328 = sst [smem:[#allocation5_spill]] %s5297_s27  ;;  %s5470_s8 = sadd.s32 4294967295, %s5309_s28   ;;  %s5309_s28 = sphi %s5455_s28, %s6357_s28   ;;  %s5305_s7 = sphi %s5453_s7, %s6359_s7   ;;  %s5301_s3 = sphi %s5451_s3, %s6361_s3   ;;  %s5297_s27 = sphi %s5449_s27, %s6360_s27  }
  0x12   : > { %6329 = sst [smem:[#allocation6_spill]] %s5305_s7  ;;  %s4310_s4 = sadd.s32 4294967294, %s5309_s28  }
  0x13   : > { %6330 = sst [smem:[#allocation7_spill]] %s5309_s28  ;;  %s5474_s29 = sadd.s32 1, %s5309_s28  }
  0x14   : > { %6331 = sst [smem:[#allocation8_spill]] %s5474_s29  ;;  %s602_s0 = sadd.s32 1, %s5305_s7 }
  0x15   : > { %s599_s9 = ssub.s32 %s5309_s28, %s5474_s29  ;;  %p612_p0 = scmp.ne.s32.totalorder %s5305_s7, %s5301_s3 }
  0x16   : > { %p600_p1 = scmp.eq.s32.totalorder %s599_s9, 0  ;;  %p613_p2 = scmp.eq.s32.totalorder %s5470_s8, 1 }
  0x17   : > { %p618_p3 = scmp.ne.s32.totalorder %s5301_s3, %s5297_s27  ;;  %p619_p4 = scmp.eq.s32.totalorder %s4310_s4, 1 }
  0x18   : > { %s5485_s30 = scalar_select %p600_p1, %s5305_s7, %s602_s0  }
  0x19   : > { %p5487_p5 = por %p613_p2, %p612_p0  ;;  %p5491_p6 = por %p619_p4, %p618_p3 }
  0x1a   : > { %6332 = sst [smem:[#allocation9_spill]] %s5485_s30  ;;  %p4313_p7 = scmp.ge.s32.totalorder %s5309_s28, 1 }
  0x1b   : > { %s6333_s2 = scalar_select %p5487_p5, 1, 0 }
  0x1c   : > { %s6335_s5 = scalar_select %p5491_p6, 1, 0 }
  0x1d   : > { %6334 = sst [smem:[#allocation10_spill]] %s6333_s2  ;;  %p722_p8 = scmp.lt.s32.totalorder %s5309_s28, 3 }
  0x1e   : > { %6336 = sst [smem:[#allocation11_spill]] %s6335_s5 }
  0x1f   : > { %p723_p9 = pnand %p4313_p7, %p722_p8 }
  0x20   : > { %p793_p10 = scmp.lt.s32.totalorder (!%p723_p9), %s5470_s8, 1  ;;  %s6337_s0 = sld [smem:[#allocation14_spill]] (!%p723_p9)  ;;  %vm814_vm0 = vcmask (!%p723_p9), 261120   ;;  %v5311_v13 = vmov (!%p723_p9), 0.0   ;;  %vm5312_vm1 = vmmov (!%p723_p9), 0   ;;  %vm1615_vm2 = vcmask (!%p723_p9), 64512  }
  0x21   : > { %726 = sbr.rel (%p723_p9) target bundleno = 5415 (0x1527), region = 124  ;;  %s6338_s7 = sld [smem:[#allocation13_spill]] (!%p723_p9)  ;;  %4702 = vmatprep.subr.bf16.mxu0 (!%p723_p9), %v5311_v13  ;;  %4710 = vmatprep.subr.bf16.mxu1 (!%p723_p9), %v5311_v13  ;;  %vm1869_vm3 = vcmask (!%p723_p9), 1043456   ;;  %vm2400_vm4 = vcmask (!%p723_p9), 523264   ;;  %vm4231_vm5 = vcmask (!%p723_p9), 122880  }
  0x22   : > { %s6339_s28 = sld [smem:[#allocation15_spill]] (!%p723_p9)  ;;  %4706 = vmatprep.mubr.msk.bf16.mxu0 (!%p723_p9), %vm5312_vm1, %v5311_v13  ;;  %4714 = vmatprep.mubr.msk.bf16.mxu1 (!%p723_p9), %vm5312_vm1, %v5311_v13  ;;  %s6341_s30 = sld [smem:[#allocation16_spill]] (!%p723_p9) }
  0x23   : > { %s6344_s27 = sld [smem:[#allocation22_spill]] (!%p723_p9)  ;;  %s6350_s2 = sld [smem:[#allocation12_spill]] (!%p723_p9) }
  0x24   : > { %s6351_s25 = sld [smem:[#allocation23_spill]] (!%p723_p9) }
  0x26   : > { %v802_v0 = vld [vmem:[%s6337_s0] sm:$0xff] (!%p723_p9)  ;;  %s5313_s0 = smov (!%p723_p9), [#allocation2]  }
  0x28   : > { %s5499_s10 = scalar_select %p793_p10, %s5470_s8, 1  ;;  %v4315_v1 = vld [vmem:[%s6339_s28] ss:$0 sm:$0xff] }
  0x29   : > { %v4316_v20 = vld [vmem:[%s6341_s30] ss:$0 sm:$0xff]  ;;  %s6342_s28 = sld [smem:[#allocation17_spill]]  ;;  %s6345_s5 = smov %s6344_s27 }
  0x2a   : > { %s4314_s6 = sshll.u32 %s5499_s10, 3  ;;  %v5151_v38 = vld [vmem:[%s6344_s27] sm:$0xff]   ;;  %v5152_v39 = vld [vmem:[%s6345_s5 + $0x10] sm:$0xff]   ;;  %v5153_v40 = vld [vmem:[%s6345_s5 + $0x8] sm:$0xff]   ;;  %s795_s9 = scalar_lea.vmem %s6350_s2, %s5499_s10 }
  0x2b   : > { %s799_s29 = scalar_lea.vmem %s6338_s7, %s4314_s6  ;;  %s6340_s6 = sld [smem:[#allocation18_spill]]  ;;  %v5154_v41 = vld [vmem:[%s6345_s5 + $0x18] sm:$0xff]   ;;  %v5155_v42 = vld [vmem:[%s6345_s5 + $0x20] sm:$0xff]   ;;  %v5156_v43 = vld [vmem:[%s6345_s5 + $0x30] sm:$0xff]  }
  0x2c   : > { %v801_v2 = vld [vmem:[%s799_s29] sm:$0xff]  ;;  %s6343_s29 = sld [smem:[#allocation20_spill]]  ;;  %v5157_v44 = vld [vmem:[%s6345_s5 + $0x28] sm:$0xff]   ;;  %v5158_v45 = vld [vmem:[%s6345_s5 + $0x38] sm:$0xff]   ;;  %s6348_s7 = sld [smem:[#allocation19_spill]] }
  0x2d   : > { %v803_v3 = vadd.f32 %v802_v0, %v801_v2 }
  0x2f   : > { %v811_v4 = vadd.f32 %v4315_v1, %v803_v3  ;;  %v4317_v22 = vld [vmem:[%s6342_s28] ss:$0 sm:$0xff]  ;;  %s6346_s28 = sld [smem:[#allocation21_spill]] }
  0x31   : > { %v815_v5 = vsel %vm814_vm0, %v811_v4, 0.0  ;;  %v5135_v11 = vld [vmem:[%s6340_s6] sm:$0xff]   ;;  %v5136_v12 = vld [vmem:[%s6340_s6 + $0x10] sm:$0xff]   ;;  %v5137_v14 = vld [vmem:[%s6340_s6 + $0x8] sm:$0xff]  }
  0x32   : > { %816 = vadd.xlane.f32.xlu0 %v815_v5  ;;  %4703 = vmatpush3.bf16.msra.mxu0 %v5135_v11  ;;  %v5138_v15 = vld [vmem:[%s6340_s6 + $0x18] sm:$0xff]   ;;  %v5139_v25 = vld [vmem:[%s6340_s6 + $0x20] sm:$0xff]   ;;  %v5140_v26 = vld [vmem:[%s6340_s6 + $0x30] sm:$0xff]   ;;  %s6349_s26 = smov %s6348_s7 }
  0x33   : > { %4711 = vmatpush3.bf16.msra.mxu1 %v5136_v12  ;;  %4704 = vmatprep.subr.bf16.mxu0 %v5311_v13  ;;  %v5141_v28 = vld [vmem:[%s6340_s6 + $0x28] sm:$0xff]   ;;  %v5142_v29 = vld [vmem:[%s6340_s6 + $0x38] sm:$0xff]   ;;  %v5143_v30 = vld [vmem:[%s6343_s29] sm:$0xff]  }
  0x34   : > { %4712 = vmatprep.subr.bf16.mxu1 %v5311_v13  ;;  %v5144_v31 = vld [vmem:[%s6343_s29 + $0x10] sm:$0xff]   ;;  %v5145_v32 = vld [vmem:[%s6343_s29 + $0x8] sm:$0xff]   ;;  %v5146_v33 = vld [vmem:[%s6343_s29 + $0x18] sm:$0xff]  }
  0x35   : > { %v5147_v34 = vld [vmem:[%s6343_s29 + $0x20] sm:$0xff]   ;;  %v5148_v35 = vld [vmem:[%s6343_s29 + $0x30] sm:$0xff]   ;;  %v5149_v36 = vld [vmem:[%s6343_s29 + $0x28] sm:$0xff]   ;;  %s6347_s1 = smov %s6346_s28 }
  0x36   : > { %4705 = vmatpush3.bf16.msra.mxu0 %v5137_v14  ;;  %v5150_v37 = vld [vmem:[%s6343_s29 + $0x38] sm:$0xff]   ;;  %v4334_v62 = vld [vmem:[%s6346_s28] ss:$0 sm:$0xff]  ;;  %v4335_v63 = vld [vmem:[%s6347_s1 + $0x1] ss:$0 sm:$0xff]  ;;  %s791_s28 = sand.u32 1, %s5301_s3  }
  0x37   : > { %4713 = vmatpush3.bf16.msra.mxu1 %v5138_v15  ;;  %4718 = vmatprep.subr.bf16.mxu0 %v5311_v13  ;;  %v4318_v12 = vld [vmem:[%s6348_s7] ss:$0 sm:$0xff]  ;;  %v4319_v14 = vld [vmem:[%s6349_s26 + $0x1] ss:$0 sm:$0xff]  ;;  %s792_s10 = scalar_lea.vmem [#allocation2], %s791_s28 }
  0x38   : > { %4726 = vmatprep.subr.bf16.mxu1 %v5311_v13  ;;  %s4246_s30 = sshll.u32 %s792_s10, 4  ;;  %s6232_s30 = int_to_ptr.vmem [resolvable:$true] %s4246_s30 }
  0x39   : > { %s5247_s4 = scalar_lea.vmem %s6232_s30, 16 }
  0x3a   : > { %p5248_p11 = scmp.ne.s32.totalorder %s6232_s30, %s5247_s4 }
  0x3c   : > { %p5249_p12 = pnand %p5248_p11, %p5487_p5 }
  0x3e   : > { %p5250_p13 = pneg %p5249_p12 }
  0xbf   : > { %v817_v6 = vpop.xlane.xlu0 %816 }
  0xc0   : > { %v819_v7 = vmul.f32 0.03125, %v817_v6 }
  0xc2   : > { %v820_v8 = vsub.f32 %v811_v4, %v819_v7 }
  0xc4   : > { %v821_v9 = vmul.f32 %v820_v8, %v820_v8 }
  0xc6   : > { %v822_v10 = vsel %vm814_vm0, %v821_v9, 0.0 }
  0xc7   : > { %823 = vadd.xlane.f32.xlu0 %v822_v10 }
 0x154   : > { %v824_v16 = vpop.xlane.xlu0 %823 }
 0x155   : > { %v825_v17 = vmul.f32 0.03125, %v824_v16 }
 0x157   : > { %v826_v18 = vadd.f32 1e-12, %v825_v17  ;;  %v4336_v17 = vld [vmem:[%s6347_s1 + $0x2] ss:$0 sm:$0xff] }
 0x159   : > { %5199 = vrsqrt.f32 %v826_v18  ;;  %v4337_v18 = vld [vmem:[%s6347_s1 + $0x3] ss:$0 sm:$0xff] }
 0x163   : > { %v5200_v19 = vpop.eup %5199 }
 0x164   : > { %v828_v21 = vmul.f32 %v5200_v19, %v820_v8 }
 0x166   : > { %v835_v23 = vmul.f32 %v4316_v20, %v828_v21 }
 0x168   : > { %v5541_v24 = vadd.f32 %v4317_v22, %v835_v23 }
 0x16a   : > { %v5551_v27 = vpack.c.bf16 %v5541_v24, %v5541_v24 }
 0x16c   : > { %4707 = vmatmul.mubr.msk.bf16.vlgmr.msra.gmra.mrb[0].mxu0 %vm814_vm0, %v5551_v27  ;;  %4715 = vmatmul.mubr.msk.bf16.vlgmr.msra.gmra.mrb[0].mxu1 %vm814_vm0, %v5551_v27 }
 0x16d   : > { %4719 = vmatpush3.bf16.msra.mxu0 %v5139_v25  ;;  %4727 = vmatpush3.bf16.msra.mxu1 %v5140_v26 }
 0x16e   : > { %4720 = vmatprep.subr.bf16.mxu0 %v5311_v13  ;;  %4728 = vmatprep.subr.bf16.mxu1 %v5311_v13 }
 0x16f   : > { %4722 = vmatprep.mubr.msk.bf16.mxu0 %vm5312_vm1, %v5311_v13  ;;  %4730 = vmatprep.mubr.msk.bf16.mxu1 %vm5312_vm1, %v5311_v13 }
 0x171   : > { %4721 = vmatpush3.bf16.msra.mxu0 %v5141_v28  ;;  %4729 = vmatpush3.bf16.msra.mxu1 %v5142_v29 }
 0x172   : > { %4734 = vmatprep.subr.bf16.mxu0 %v5311_v13  ;;  %4742 = vmatprep.subr.bf16.mxu1 %v5311_v13 }
 0x174   : > { %4723 = vmatmul.mubr.msk.bf16.vlgmr.msra.gmra.mrb[4].mxu0 %vm814_vm0, %v5551_v27  ;;  %4731 = vmatmul.mubr.msk.bf16.vlgmr.msra.gmra.mrb[4].mxu1 %vm814_vm0, %v5551_v27 }
 0x175   : > { %4735 = vmatpush3.bf16.msra.mxu0 %v5143_v30  ;;  %4743 = vmatpush3.bf16.msra.mxu1 %v5144_v31 }
 0x176   : > { %4736 = vmatprep.subr.bf16.mxu0 %v5311_v13  ;;  %4744 = vmatprep.subr.bf16.mxu1 %v5311_v13 }
 0x177   : > { %4738 = vmatprep.mubr.msk.bf16.mxu0 %vm5312_vm1, %v5311_v13  ;;  %4746 = vmatprep.mubr.msk.bf16.mxu1 %vm5312_vm1, %v5311_v13 }
 0x179   : > { %4737 = vmatpush3.bf16.msra.mxu0 %v5145_v32  ;;  %4745 = vmatpush3.bf16.msra.mxu1 %v5146_v33 }
 0x17a   : > { %4750 = vmatprep.subr.bf16.mxu0 %v5311_v13  ;;  %4758 = vmatprep.subr.bf16.mxu1 %v5311_v13 }
 0x17c   : > { %4739 = vmatmul.mubr.msk.bf16.vlgmr.msra.gmra.mrb[8].mxu0 %vm814_vm0, %v5551_v27  ;;  %4747 = vmatmul.mubr.msk.bf16.vlgmr.msra.gmra.mrb[8].mxu1 %vm814_vm0, %v5551_v27 }
 0x17d   : > { %4751 = vmatpush3.bf16.msra.mxu0 %v5147_v34  ;;  %4759 = vmatpush3.bf16.msra.mxu1 %v5148_v35 }
 0x17e   : > { %4752 = vmatprep.subr.bf16.mxu0 %v5311_v13  ;;  %4760 = vmatprep.subr.bf16.mxu1 %v5311_v13 }
 0x17f   : > { %4754 = vmatprep.mubr.msk.bf16.mxu0 %vm5312_vm1, %v5311_v13  ;;  %4762 = vmatprep.mubr.msk.bf16.mxu1 %vm5312_vm1, %v5311_v13 }
 0x181   : > { %4753 = vmatpush3.bf16.msra.mxu0 %v5149_v36  ;;  %4761 = vmatpush3.bf16.msra.mxu1 %v5150_v37  ;;  %v4320_v36 = vld [vmem:[%s6349_s26 + $0x2] ss:$0 sm:$0xff]  ;;  %v4321_v37 = vld [vmem:[%s6349_s26 + $0x3] ss:$0 sm:$0xff] }
 0x182   : > { %4766 = vmatprep.subr.bf16.mxu0 %v5311_v13  ;;  %4774 = vmatprep.subr.bf16.mxu1 %v5311_v13 }
 0x184   : > { %4755 = vmatmul.mubr.msk.bf16.vlgmr.msra.gmra.mrb[12].mxu0 %vm814_vm0, %v5551_v27  ;;  %4763 = vmatmul.mubr.msk.bf16.vlgmr.msra.gmra.mrb[12].mxu1 %vm814_vm0, %v5551_v27 }
 0x185   : > { %4767 = vmatpush3.bf16.msra.mxu0 %v5151_v38  ;;  %4775 = vmatpush3.bf16.msra.mxu1 %v5152_v39 }
 0x186   : > { %4768 = vmatprep.subr.bf16.mxu0 %v5311_v13  ;;  %4776 = vmatprep.subr.bf16.mxu1 %v5311_v13 }
 0x187   : > { %4770 = vmatprep.mubr.msk.bf16.mxu0 %vm5312_vm1, %v5311_v13  ;;  %4778 = vmatprep.mubr.msk.bf16.mxu1 %vm5312_vm1, %v5311_v13 }
 0x189   : > { %4769 = vmatpush3.bf16.msra.mxu0 %v5153_v40  ;;  %4777 = vmatpush3.bf16.msra.mxu1 %v5154_v41  ;;  %v4350_v40 = vld [vmem:[%s6283_s11] ss:$0 sm:$0xff]  ;;  %v4351_v41 = vld [vmem:[%s6283_s11 + $0x1] ss:$0 sm:$0xff] }
 0x18a   : > { %4782 = vmatprep.subr.bf16.mxu0 %v5311_v13  ;;  %4790 = vmatprep.subr.bf16.mxu1 %v5311_v13 }
 0x18c   : > { %4771 = vmatmul.mubr.msk.bf16.vlgmr.msra.gmra.mrb[16].mxu0 %vm814_vm0, %v5551_v27  ;;  %4779 = vmatmul.mubr.msk.bf16.vlgmr.msra.gmra.mrb[16].mxu1 %vm814_vm0, %v5551_v27 }
 0x18d   : > { %4783 = vmatpush3.bf16.msra.mxu0 %v5155_v42  ;;  %4791 = vmatpush3.bf16.msra.mxu1 %v5156_v43 }
 0x18e   : > { %4784 = vmatprep.subr.bf16.mxu0 %v5311_v13  ;;  %4792 = vmatprep.subr.bf16.mxu1 %v5311_v13 }
 0x18f   : > { %4786 = vmatprep.mubr.msk.bf16.mxu0 %vm5312_vm1, %v5311_v13  ;;  %4794 = vmatprep.mubr.msk.bf16.mxu1 %vm5312_vm1, %v5311_v13 }
 0x191   : > { %4785 = vmatpush3.bf16.msra.mxu0 %v5157_v44  ;;  %4793 = vmatpush3.bf16.msra.mxu1 %v5158_v45 }
 0x192   : > { %4798 = vmatprep.subr.bf16.mxu0 %v5311_v13  ;;  %4804 = vmatprep.subr.bf16.mxu1 %v5311_v13 }
 0x194   : > { %4787 = vmatmul.mubr.msk.bf16.vlgmr.msra.gmra.mrb[20].mxu0 %vm814_vm0, %v5551_v27  ;;  %4795 = vmatmul.mubr.msk.bf16.vlgmr.msra.gmra.mrb[20].mxu1 %vm814_vm0, %v5551_v27 }
 0x195   : > { %4800 = vmatprep.mubr.msk.bf16.mxu0 %vm5312_vm1, %v5311_v13  ;;  %4806 = vmatprep.mubr.msk.bf16.mxu1 %vm5312_vm1, %v5311_v13 }
 0x23f   : > { %v941_v46 = vpop.f32.mrb[0].mxu0  ;;  %v993_v47 = vpop.f32.mrb[0].mxu1 }
 0x240   : > { %v4708_v48 = vpop.f32.mrb[1].mxu0  ;;  %v4716_v49 = vpop.f32.mrb[1].mxu1  ;;  %v942_v19 = vadd.f32 %v4318_v12, %v941_v46  ;;  %v994_v20 = vadd.f32 %v4319_v14, %v993_v47 }
 0x241   : > { %v944_v50 = vpop.f32.mrb[2].mxu0  ;;  %v996_v51 = vpop.f32.mrb[2].mxu1 }
 0x242   : > { %v4709_v52 = vpop.f32.mrb[3].mxu0  ;;  %v4717_v53 = vpop.f32.mrb[3].mxu1  ;;  %v1607_v30 = vpack.c.bf16 %v942_v19, %v942_v19  ;;  %v1608_v31 = vpack.c.bf16 %v994_v20, %v994_v20 }
 0x247   : > { %v1045_v54 = vpop.f32.mrb[4].mxu0  ;;  %v1097_v55 = vpop.f32.mrb[4].mxu1 }
 0x248   : > { %v4724_v56 = vpop.f32.mrb[5].mxu0  ;;  %v4732_v57 = vpop.f32.mrb[5].mxu1  ;;  %v1046_v42 = vadd.f32 %v4320_v36, %v1045_v54  ;;  %v1098_v43 = vadd.f32 %v4321_v37, %v1097_v55 }
 0x249   : > { %v1048_v58 = vpop.f32.mrb[6].mxu0  ;;  %v1100_v59 = vpop.f32.mrb[6].mxu1 }
 0x24a   : > { %v4725_v60 = vpop.f32.mrb[7].mxu0  ;;  %v4733_v61 = vpop.f32.mrb[7].mxu1  ;;  %v1609_v52 = vpack.c.bf16 %v1046_v42, %v1046_v42  ;;  %v1610_v53 = vpack.c.bf16 %v1098_v43, %v1098_v43 }
 0x24f   : > { %v1193_v0 = vpop.f32.mrb[8].mxu0  ;;  %v1245_v1 = vpop.f32.mrb[8].mxu1 }
 0x250   : > { %v1194_v2 = vadd.f32 %v4334_v62, %v1193_v0  ;;  %v1246_v3 = vadd.f32 %v4335_v63, %v1245_v1  ;;  %v4740_v4 = vpop.f32.mrb[9].mxu0  ;;  %v4748_v5 = vpop.f32.mrb[9].mxu1 }
 0x251   : > { %v1196_v6 = vpop.f32.mrb[10].mxu0  ;;  %v1248_v7 = vpop.f32.mrb[10].mxu1  ;;  %v843_v4 = vld [vmem:[%s795_s9] sm:$0x1]  ;;  %v1805_v5 = vlaneseq  ;;  %s4557_s9 = sshll.u32 %s5470_s8, 4  ;;  %s4234_s8 = scalar_lea.sflag [#allocation3], %s791_s28 }
 0x252   : > { %v1611_v8 = vpack.c.bf16 %v1194_v2, %v1194_v2  ;;  %v1612_v9 = vpack.c.bf16 %v1246_v3, %v1246_v3  ;;  %v4741_v10 = vpop.f32.mrb[11].mxu0  ;;  %v4749_v11 = vpop.f32.mrb[11].mxu1  ;;  %v844_v6 = vcvt.s32.f32 %v843_v4 }
 0x253   : > { %v1806_v7 = vshrl.u32 %v1805_v5, 7  ;;  %v4353_v5 = vld [vmem:[%s6283_s11 + $0x3] ss:$0 sm:$0xff] }
 0x254   : > { %v1620_v15 = vsel %vm1615_vm2, %v1611_v8, 0  ;;  %v1666_v16 = vsel %vm1615_vm2, %v1612_v9, 0  ;;  %v845_v8 = vsub.f32 1.0, %v844_v6 }
 0x255   : > { %4799 = vmatpush3.bf16.xpose.msra.mxu0 %v1620_v15  ;;  %4805 = vmatpush3.bf16.xpose.msra.mxu1 %v1666_v16  ;;  %v1807_v9 = vsub.s32 0, %v1806_v7 }
 0x256   : > { %4810 = vmatprep.subr.bf16.mxu0 %v5311_v13  ;;  %4816 = vmatprep.subr.bf16.mxu1 %v5311_v13  ;;  %v846_v10 = vmul.f32 -10000.0, %v845_v8 }
 0x257   : > { %v1297_v21 = vpop.f32.mrb[12].mxu0  ;;  %v1349_v22 = vpop.f32.mrb[12].mxu1 }
 0x258   : > { %v1298_v23 = vadd.f32 %v4336_v17, %v1297_v21  ;;  %v1350_v25 = vadd.f32 %v4337_v18, %v1349_v22  ;;  %v4756_v26 = vpop.f32.mrb[13].mxu0  ;;  %v4764_v27 = vpop.f32.mrb[13].mxu1  ;;  %v5737_v11 = vrot.slane %v846_v10, %v1807_v9 }
 0x259   : > { %v1300_v28 = vpop.f32.mrb[14].mxu0  ;;  %v1352_v29 = vpop.f32.mrb[14].mxu1 }
 0x25a   : > { %v1613_v32 = vpack.c.bf16 %v1298_v23, %v1298_v23  ;;  %v1614_v33 = vpack.c.bf16 %v1350_v25, %v1350_v25  ;;  %v4757_v34 = vpop.f32.mrb[15].mxu0  ;;  %v4765_v35 = vpop.f32.mrb[15].mxu1 }
 0x25c   : > { %v1712_v38 = vsel %vm1615_vm2, %v1613_v32, 0  ;;  %v1758_v39 = vsel %vm1615_vm2, %v1614_v33, 0  ;;  %4801 = vmatmul.mubr.msk.bf16.vlgmr.msra.gmra.mrb[24].mxu0 %vm1615_vm2, %v1607_v30  ;;  %4807 = vmatmul.mubr.msk.bf16.vlgmr.msra.gmra.mrb[24].mxu1 %vm1615_vm2, %v1608_v31 }
 0x25d   : > { %4811 = vmatpush3.bf16.xpose.msra.mxu0 %v1712_v38  ;;  %4817 = vmatpush3.bf16.xpose.msra.mxu1 %v1758_v39 }
 0x25e   : > { %4812 = vmatprep.mubr.msk.bf16.mxu0 %vm5312_vm1, %v5311_v13  ;;  %4818 = vmatprep.mubr.msk.bf16.mxu1 %vm5312_vm1, %v5311_v13 }
 0x25f   : > { %v1445_v44 = vpop.f32.mrb[16].mxu0  ;;  %v1497_v45 = vpop.f32.mrb[16].mxu1  ;;  %4822 = vmatprep.subr.bf16.mxu0 %v5311_v13  ;;  %4828 = vmatprep.subr.bf16.mxu1 %v5311_v13 }
 0x260   : > { %v1446_v46 = vadd.f32 %v4350_v40, %v1445_v44  ;;  %v1498_v47 = vadd.f32 %v4351_v41, %v1497_v45  ;;  %v4772_v48 = vpop.f32.mrb[17].mxu0  ;;  %v4780_v49 = vpop.f32.mrb[17].mxu1 }
 0x261   : > { %v1448_v50 = vpop.f32.mrb[18].mxu0  ;;  %v1500_v51 = vpop.f32.mrb[18].mxu1 }
 0x262   : > { %v1862_v54 = vpack.c.bf16 %v1446_v46, %v1446_v46  ;;  %v1863_v55 = vpack.c.bf16 %v1498_v47, %v1498_v47  ;;  %v4773_v56 = vpop.f32.mrb[19].mxu0  ;;  %v4781_v57 = vpop.f32.mrb[19].mxu1 }
 0x264   : > { %v1871_v58 = vsel %vm1869_vm3, %v1862_v54, 0  ;;  %v1917_v59 = vsel %vm1869_vm3, %v1863_v55, 0  ;;  %4813 = vmatmul.mubr.msk.bf16.vlgmr.msra.gmra.mrb[28].mxu0 %vm1615_vm2, %v1609_v52  ;;  %4819 = vmatmul.mubr.msk.bf16.vlgmr.msra.gmra.mrb[28].mxu1 %vm1615_vm2, %v1610_v53 }
 0x265   : > { %4823 = vmatpush3.bf16.msra.mxu0 %v1871_v58  ;;  %4829 = vmatpush3.bf16.msra.mxu1 %v1917_v59 }
 0x266   : > { %4824 = vmatprep.mubr.msk.bf16.mxu0 %vm5312_vm1, %v5311_v13  ;;  %4834 = vmatprep.subr.bf16.mxu0 %v5311_v13 }
 0x267   : > { %v5726_v60 = vpop.f32.mrb[20].mxu0  ;;  %v5728_v61 = vpop.f32.mrb[20].mxu1  ;;  %4830 = vmatprep.mubr.msk.bf16.mxu1 %vm5312_vm1, %v5311_v13  ;;  %4840 = vmatprep.subr.bf16.mxu1 %v5311_v13 }
 0x268   : > { %v4788_v62 = vpop.f32.mrb[21].mxu0  ;;  %v4796_v63 = vpop.f32.mrb[21].mxu1  ;;  %v1602_v9 = vadd.f32 %v4353_v5, %v5728_v61  ;;  %v2055_v61 = vld [vmem:[%s6284_s12] sm:$0xf] }
 0x269   : > { %v1552_v0 = vpop.f32.mrb[22].mxu0  ;;  %v1604_v1 = vpop.f32.mrb[22].mxu1 }
 0x26a   : > { %v4789_v2 = vpop.f32.mrb[23].mxu0  ;;  %v4797_v3 = vpop.f32.mrb[23].mxu1 }
 0x26b   : > { %v4352_v2 = vld [vmem:[%s6283_s11 + $0x2] ss:$0 sm:$0xff] }
 0x26c   : > { %v1550_v3 = vadd.f32 %v4352_v2, %v5726_v60 }
 0x26e   : > { %v1864_v8 = vpack.c.bf16 %v1550_v3, %v1550_v3 }
 0x32f   : > { %v1656_v12 = vpop.f32.mrb[24].mxu0  ;;  %v1702_v14 = vpop.f32.mrb[24].mxu1 }
 0x330   : > { %v1800_v15 = vmul.f32 0.35355338, %v1656_v12  ;;  %v1801_v16 = vmul.f32 0.35355338, %v1702_v14  ;;  %v4802_v17 = vpop.f32.mrb[25].mxu0  ;;  %v4808_v18 = vpop.f32.mrb[25].mxu1 }
 0x331   : > { %v1659_v19 = vpop.f32.mrb[26].mxu0  ;;  %v1705_v20 = vpop.f32.mrb[26].mxu1 }
 0x332   : > { %v4803_v21 = vpop.f32.mrb[27].mxu0  ;;  %v4809_v22 = vpop.f32.mrb[27].mxu1  ;;  %v1810_v23 = vadd.f32 %v5737_v11, %v1800_v15  ;;  %v1811_v25 = vadd.f32 %v5737_v11, %v1801_v16  ;;  %v1963_v15 = vsel %vm1869_vm3, %v1864_v8, 0  ;;  %v1865_v16 = vpack.c.bf16 %v1602_v9, %v1602_v9 }
 0x334   : > { %v1814_v26 = vsel %vm1615_vm2, %v1810_v23, -inf  ;;  %v1817_v29 = vsel %vm1615_vm2, %v1811_v25, -inf  ;;  %v2009_v20 = vsel %vm1869_vm3, %v1865_v16, 0 }
 0x335   : > { %1815 = vmax.xlane.f32.xlu1 %v1814_v26 }
 0x337   : > { %v1748_v27 = vpop.f32.mrb[28].mxu0  ;;  %v1794_v28 = vpop.f32.mrb[28].mxu1 }
 0x338   : > { %v1802_v30 = vmul.f32 0.35355338, %v1748_v27  ;;  %v1803_v31 = vmul.f32 0.35355338, %v1794_v28  ;;  %v4814_v32 = vpop.f32.mrb[29].mxu0  ;;  %v4820_v33 = vpop.f32.mrb[29].mxu1 }
 0x339   : > { %v1751_v34 = vpop.f32.mrb[30].mxu0  ;;  %v1797_v35 = vpop.f32.mrb[30].mxu1  ;;  %1818 = vmax.xlane.f32.xlu1 %v1817_v29  ;;  %v2056_v27 = vld [vmem:[%s6284_s12 + $0x4] sm:$0xf]  ;;  %v2057_v29 = vld [vmem:[%s6284_s12 + $0x8] sm:$0xf] }
 0x33a   : > { %v4815_v36 = vpop.f32.mrb[31].mxu0  ;;  %v4821_v37 = vpop.f32.mrb[31].mxu1  ;;  %v1812_v38 = vadd.f32 %v5737_v11, %v1802_v30  ;;  %v1813_v39 = vadd.f32 %v5737_v11, %v1803_v31  ;;  %v2109_v28 = vsel %vm1869_vm3, %v2056_v27, 0  ;;  %v2155_v33 = vsel %vm1869_vm3, %v2057_v29, 0  ;;  %v2058_v35 = vld [vmem:[%s6284_s12 + $0xc] sm:$0xf] }
 0x33b   : > { %v4379_v29 = vld [vmem:[%s6286_s14] ss:$0 sm:$0xff] }
 0x33c   : > { %v1820_v40 = vsel %vm1615_vm2, %v1812_v38, -inf  ;;  %v1823_v41 = vsel %vm1615_vm2, %v1813_v39, -inf }
 0x33d   : > { %1821 = vmax.xlane.f32.xlu0 %v1820_v40  ;;  %1824 = vmax.xlane.f32.xlu1 %v1823_v41  ;;  %v2201_v40 = vsel %vm1869_vm3, %v2058_v35, 0  ;;  %v5161_v35 = vld [vmem:[%s6290_s18] sm:$0xff]  }
 0x3c2   : > { %v1816_v42 = vpop.xlane.xlu1 %1815 }
 0x3c3   : > { %v1826_v43 = vsub.f32 %v1810_v23, %v1816_v42 }
 0x3c5   : > { %v1830_v44 = vmul.f32 1.442695, %v1826_v43 }
 0x3c6   : > { %v1819_v45 = vpop.xlane.xlu1 %1818 }
 0x3c7   : > { %5201 = vpow2.f32 %v1830_v44  ;;  %v1827_v46 = vsub.f32 %v1811_v25, %v1819_v45  ;;  %v2063_v25 = vsel %vm1869_vm3, %v2055_v61, 0 }
 0x3c9   : > { %v1832_v47 = vmul.f32 1.442695, %v1827_v46 }
 0x3ca   : > { %v1822_v48 = vpop.xlane.xlu0 %1821  ;;  %v1825_v49 = vpop.xlane.xlu1 %1824 }
 0x3cb   : > { %5203 = vpow2.f32 %v1832_v47  ;;  %v1828_v50 = vsub.f32 %v1812_v38, %v1822_v48  ;;  %v1829_v51 = vsub.f32 %v1813_v39, %v1825_v49 }
 0x3cd   : > { %v1834_v52 = vmul.f32 1.442695, %v1828_v50  ;;  %v1836_v53 = vmul.f32 1.442695, %v1829_v51 }
 0x3cf   : > { %5205 = vpow2.f32 %v1834_v52 }
 0x3d0   : > { %5207 = vpow2.f32 %v1836_v53 }
 0x3d1   : > { %v5202_v54 = vpop.eup %5201 }
 0x3d2   : > { %v1838_v55 = vsel %vm1615_vm2, %v5202_v54, 0.0 }
 0x3d3   : > { %1839 = vadd.xlane.f32.xlu0 %v1838_v55 }
 0x3d5   : > { %v5204_v56 = vpop.eup %5203 }
 0x3d6   : > { %v1841_v57 = vsel %vm1615_vm2, %v5204_v56, 0.0 }
 0x3d7   : > { %1842 = vadd.xlane.f32.xlu1 %v1841_v57 }
 0x3d9   : > { %v5206_v58 = vpop.eup %5205 }
 0x3da   : > { %v5208_v59 = vpop.eup %5207  ;;  %v1844_v62 = vsel %vm1615_vm2, %v5206_v58, 0.0 }
 0x3db   : > { %1845 = vadd.xlane.f32.xlu0 %v1844_v62  ;;  %v1847_v63 = vsel %vm1615_vm2, %v5208_v59, 0.0 }
 0x3dc   : > { %1848 = vadd.xlane.f32.xlu1 %v1847_v63 }
 0x460   : > { %v1840_v0 = vpop.xlane.xlu0 %1839 }
 0x461   : > { %5209 = vrcp.f32 %v1840_v0 }
 0x464   : > { %v1843_v1 = vpop.xlane.xlu1 %1842 }
 0x465   : > { %5211 = vrcp.f32 %v1843_v1 }
 0x468   : > { %v1846_v4 = vpop.xlane.xlu0 %1845 }
 0x469   : > { %5213 = vrcp.f32 %v1846_v4  ;;  %v1849_v6 = vpop.xlane.xlu1 %1848 }
 0x46a   : > { %5215 = vrcp.f32 %v1849_v6 }
 0x46b   : > { %v5210_v7 = vpop.eup %5209 }
 0x46c   : > { %v1854_v10 = vmul.f32 %v5210_v7, %v5202_v54 }
 0x46e   : > { %v1858_v12 = vpack.c.bf16 %v1854_v10, %v1854_v10  ;;  %v4378_v10 = vld [vmem:[%s6285_s13] ss:$0 sm:$0xff] }
 0x46f   : > { %v5212_v14 = vpop.eup %5211 }
 0x470   : > { %v1855_v17 = vmul.f32 %v5212_v14, %v5204_v56  ;;  %4825 = vmatmul.mubr.msk.bf16.vlgmr.msra.gmra.mrb[32].mxu0 %vm1615_vm2, %v1858_v12 }
 0x471   : > { %4835 = vmatpush3.bf16.msra.mxu0 %v1963_v15  ;;  %4836 = vmatprep.mubr.msk.bf16.mxu0 %vm5312_vm1, %v5311_v13 }
 0x472   : > { %v1859_v60 = vpack.c.bf16 %v1855_v17, %v1855_v17  ;;  %4846 = vmatprep.subr.bf16.mxu0 %v5311_v13 }
 0x473   : > { %v5214_v18 = vpop.eup %5213 }
 0x474   : > { %v5216_v19 = vpop.eup %5215  ;;  %v1856_v21 = vmul.f32 %v5214_v18, %v5206_v58  ;;  %4831 = vmatmul.mubr.msk.bf16.vlgmr.msra.gmra.mrb[32].mxu1 %vm1615_vm2, %v1859_v60 }
 0x475   : > { %4841 = vmatpush3.bf16.msra.mxu1 %v2009_v20  ;;  %4842 = vmatprep.mubr.msk.bf16.mxu1 %vm5312_vm1, %v5311_v13  ;;  %v1857_v22 = vmul.f32 %v5216_v19, %v5208_v59 }
 0x476   : > { %v1860_v23 = vpack.c.bf16 %v1856_v21, %v1856_v21  ;;  %4852 = vmatprep.subr.bf16.mxu1 %v5311_v13 }
 0x477   : > { %v1861_v26 = vpack.c.bf16 %v1857_v22, %v1857_v22 }
 0x478   : > { %4837 = vmatmul.mubr.msk.bf16.vlgmr.msra.gmra.mrb[36].mxu0 %vm1615_vm2, %v1860_v23  ;;  %v5159_v23 = vld [vmem:[%s6288_s16] sm:$0xff]  }
 0x479   : > { %4847 = vmatpush3.bf16.msra.mxu0 %v2063_v25  ;;  %4848 = vmatprep.mubr.msk.bf16.mxu0 %vm5312_vm1, %v5311_v13  ;;  %v5160_v25 = vld [vmem:[%s6288_s16 + $0x8] sm:$0xff]  }
 0x47a   : > { %4858 = vmatprep.subr.bf16.mxu0 %v5311_v13 }
 0x47c   : > { %4843 = vmatmul.mubr.msk.bf16.vlgmr.msra.gmra.mrb[36].mxu1 %vm1615_vm2, %v1861_v26 }
 0x47d   : > { %4854 = vmatprep.mubr.msk.bf16.mxu1 %vm5312_vm1, %v5311_v13  ;;  %4853 = vmatpush3.bf16.msra.mxu1 %v2109_v28 }
 0x47e   : > { %4864 = vmatprep.subr.bf16.mxu1 %v5311_v13 }
 0x543   : > { %v1907_v30 = vpop.f32.mrb[32].mxu0 }
 0x544   : > { %v2051_v31 = vpack.c.bf16 %v1907_v30, %v1907_v30  ;;  %v4826_v32 = vpop.f32.mrb[33].mxu0 }
 0x545   : > { %v1910_v34 = vpop.f32.mrb[34].mxu0 }
 0x546   : > { %v4827_v36 = vpop.f32.mrb[35].mxu0  ;;  %4849 = vmatmul.mubr.msk.bf16.vlgmr.msra.gmra.mrb[40].mxu0 %vm1615_vm2, %v2051_v31  ;;  %v4380_v31 = vld [vmem:[%s6287_s15] ss:$0 sm:$0xff] }
 0x547   : > { %v1953_v37 = vpop.f32.mrb[32].mxu1  ;;  %4859 = vmatpush3.bf16.msra.mxu0 %v2155_v33  ;;  %4860 = vmatprep.mubr.msk.bf16.mxu0 %vm5312_vm1, %v5311_v13  ;;  %v5162_v36 = vld [vmem:[%s6290_s18 + $0x8] sm:$0xff]  }
 0x548   : > { %v2052_v38 = vpack.c.bf16 %v1953_v37, %v1953_v37  ;;  %v4832_v39 = vpop.f32.mrb[33].mxu1  ;;  %4870 = vmatprep.subr.bf16.mxu0 %v5311_v13  ;;  %v5163_v37 = vld [vmem:[%s6290_s18 + $0x10] sm:$0xff]  }
 0x549   : > { %v1956_v41 = vpop.f32.mrb[34].mxu1  ;;  %v4381_v39 = vld [vmem:[%s6289_s17] ss:$0 sm:$0xff] }
 0x54a   : > { %v4833_v42 = vpop.f32.mrb[35].mxu1  ;;  %4855 = vmatmul.mubr.msk.bf16.vlgmr.msra.gmra.mrb[40].mxu1 %vm1615_vm2, %v2052_v38  ;;  %v5164_v38 = vld [vmem:[%s6290_s18 + $0x18] sm:$0xff]  }
 0x54b   : > { %v1999_v43 = vpop.f32.mrb[36].mxu0  ;;  %4865 = vmatpush3.bf16.msra.mxu1 %v2201_v40  ;;  %4866 = vmatprep.mubr.msk.bf16.mxu1 %vm5312_vm1, %v5311_v13 }
 0x54c   : > { %v2053_v44 = vpack.c.bf16 %v1999_v43, %v1999_v43  ;;  %v4838_v45 = vpop.f32.mrb[37].mxu0  ;;  %4878 = vmatprep.subr.bf16.mxu1 %v5311_v13 }
 0x54d   : > { %v2002_v46 = vpop.f32.mrb[38].mxu0 }
 0x54e   : > { %v4839_v47 = vpop.f32.mrb[39].mxu0  ;;  %4861 = vmatmul.mubr.msk.bf16.vlgmr.msra.gmra.mrb[44].mxu0 %vm1615_vm2, %v2053_v44 }
 0x54f   : > { %v2045_v48 = vpop.f32.mrb[36].mxu1  ;;  %4874 = vmatprep.mubr.msk.bf16.mxu0 %vm5312_vm1, %v5311_v13  ;;  %4871 = vmatpush3.bf16.msra.mxu0 %v5159_v23  ;;  %v5176_v23 = vld [vmem:[%s6343_s29 + $0x68] sm:$0xff]  }
 0x550   : > { %v2054_v49 = vpack.c.bf16 %v2045_v48, %v2045_v48  ;;  %v4844_v50 = vpop.f32.mrb[37].mxu1  ;;  %4872 = vmatprep.subr.bf16.mxu0 %v5311_v13 }
 0x551   : > { %v2048_v51 = vpop.f32.mrb[38].mxu1 }
 0x552   : > { %v4845_v52 = vpop.f32.mrb[39].mxu1  ;;  %4867 = vmatmul.mubr.msk.bf16.vlgmr.msra.gmra.mrb[44].mxu1 %vm1615_vm2, %v2054_v49  ;;  %v4385_v51 = vld [vmem:[%s6291_s19] ss:$0 sm:$0xff] }
 0x553   : > { %4886 = vmatprep.mubr.msk.bf16.mxu1 %vm5312_vm1, %v5311_v13  ;;  %4873 = vmatpush3.bf16.msra.mxu0 %v5160_v25  ;;  %v5177_v25 = vld [vmem:[%s6343_s29 + $0x50] sm:$0xff]  }
 0x554   : > { %4890 = vmatprep.subr.bf16.mxu0 %v5311_v13  ;;  %4879 = vmatpush3.bf16.msra.mxu1 %v5161_v35  ;;  %v5188_v35 = vld [vmem:[%s6345_s5 + $0x78] sm:$0xff]  }
 0x555   : > { %4880 = vmatprep.subr.bf16.mxu1 %v5311_v13 }
 0x558   : > { %4881 = vmatpush3.bf16.msra.mxu1 %v5162_v36 }
 0x559   : > { %4882 = vmatprep.subr.bf16.mxu1 %v5311_v13 }
 0x55c   : > { %4883 = vmatpush3.bf16.msra.mxu1 %v5163_v37 }
 0x55d   : > { %4884 = vmatprep.subr.bf16.mxu1 %v5311_v13 }
 0x560   : > { %4885 = vmatpush3.bf16.msra.mxu1 %v5164_v38 }
 0x561   : > { %4906 = vmatprep.subr.bf16.mxu1 %v5311_v13 }
 0x619   : > { %v2099_v53 = vpop.f32.mrb[40].mxu0 }
 0x61a   : > { %v4850_v54 = vpop.f32.mrb[41].mxu0  ;;  %v2243_v58 = vsel %vm814_vm0, %v2099_v53, 0.0 }
 0x61b   : > { %v2102_v55 = vpop.f32.mrb[42].mxu0 }
 0x61c   : > { %v4851_v56 = vpop.f32.mrb[43].mxu0 }
 0x61d   : > { %v2145_v57 = vpop.f32.mrb[40].mxu1 }
 0x61e   : > { %v2244_v59 = vsel %vm814_vm0, %v2145_v57, 0.0  ;;  %v4856_v62 = vpop.f32.mrb[41].mxu1 }
 0x61f   : > { %v2245_v63 = vadd.f32 %v2244_v59, %v2243_v58  ;;  %v2148_v0 = vpop.f32.mrb[42].mxu1 }
 0x620   : > { %v4857_v1 = vpop.f32.mrb[43].mxu1 }
 0x621   : > { %v2191_v2 = vpop.f32.mrb[44].mxu0 }
 0x622   : > { %v2246_v3 = vsel %vm814_vm0, %v2191_v2, 0.0  ;;  %v4862_v4 = vpop.f32.mrb[45].mxu0  ;;  %v5165_v2 = vld [vmem:[%s6340_s6 + $0x40] sm:$0xff]  }
 0x623   : > { %v2247_v5 = vadd.f32 %v2246_v3, %v2245_v63  ;;  %v2194_v6 = vpop.f32.mrb[46].mxu0  ;;  %v5166_v3 = vld [vmem:[%s6340_s6 + $0x60] sm:$0xff]   ;;  %v5167_v4 = vld [vmem:[%s6340_s6 + $0x48] sm:$0xff]  }
 0x624   : > { %v4863_v7 = vpop.f32.mrb[47].mxu0 }
 0x625   : > { %v2237_v8 = vpop.f32.mrb[44].mxu1 }
 0x626   : > { %v2248_v9 = vsel %vm814_vm0, %v2237_v8, 0.0  ;;  %v4868_v12 = vpop.f32.mrb[45].mxu1 }
 0x627   : > { %v2249_v14 = vadd.f32 %v2248_v9, %v2247_v5  ;;  %v2240_v15 = vpop.f32.mrb[46].mxu1  ;;  %v5168_v5 = vld [vmem:[%s6340_s6 + $0x68] sm:$0xff]  }
 0x628   : > { %v4869_v16 = vpop.f32.mrb[47].mxu1 }
 0x629   : > { %v2257_v17 = vadd.f32 %v4378_v10, %v2249_v14  ;;  %v4391_v10 = vld [vmem:[%s6292_s20] ss:$0 sm:$0xff] }
 0x62a   : > { %v4392_v14 = vld [vmem:[%s6293_s21] ss:$0 sm:$0xff] }
 0x62b   : > { %v2258_v60 = vadd.f32 %v2257_v17, %v5541_v24  ;;  %v5169_v17 = vld [vmem:[%s6340_s6 + $0x50] sm:$0xff]  }
 0x62d   : > { %v2261_v18 = vsel %vm814_vm0, %v2258_v60, 0.0 }
 0x62e   : > { %2262 = vadd.xlane.f32.xlu0 %v2261_v18 }
 0x6bb   : > { %v2263_v61 = vpop.xlane.xlu0 %2262 }
 0x6bc   : > { %v2264_v19 = vmul.f32 0.03125, %v2263_v61  ;;  %v5171_v61 = vld [vmem:[%s6340_s6 + $0x58] sm:$0xff]  }
 0x6be   : > { %v2265_v20 = vsub.f32 %v2258_v60, %v2264_v19  ;;  %v5170_v60 = vld [vmem:[%s6343_s29 + $0x40] sm:$0xff]   ;;  %v5172_v19 = vld [vmem:[%s6343_s29 + $0x48] sm:$0xff]  }
 0x6c0   : > { %v2266_v21 = vmul.f32 %v2265_v20, %v2265_v20 }
 0x6c2   : > { %v2267_v22 = vsel %vm814_vm0, %v2266_v21, 0.0  ;;  %v5174_v21 = vld [vmem:[%s6343_s29 + $0x60] sm:$0xff]  }
 0x6c3   : > { %2268 = vadd.xlane.f32.xlu1 %v2267_v22  ;;  %v5175_v22 = vld [vmem:[%s6340_s6 + $0x78] sm:$0xff]  }
 0x750   : > { %v2269_v24 = vpop.xlane.xlu1 %2268 }
 0x751   : > { %v2270_v26 = vmul.f32 0.03125, %v2269_v24  ;;  %v5178_v24 = vld [vmem:[%s6345_s5 + $0x40] sm:$0xff]  }
 0x753   : > { %v2271_v27 = vadd.f32 1e-12, %v2270_v26  ;;  %v5179_v26 = vld [vmem:[%s6343_s29 + $0x58] sm:$0xff]  }
 0x755   : > { %5217 = vrsqrt.f32 %v2271_v27  ;;  %v5180_v27 = vld [vmem:[%s6345_s5 + $0x48] sm:$0xff]  }
 0x75f   : > { %v5218_v28 = vpop.eup %5217 }
 0x760   : > { %v2273_v30 = vmul.f32 %v5218_v28, %v2265_v20  ;;  %v5173_v20 = vld [vmem:[%s6340_s6 + $0x70] sm:$0xff]  }
 0x761   : > { %v5181_v28 = vld [vmem:[%s6343_s29 + $0x70] sm:$0xff]  }
 0x762   : > { %v2280_v32 = vmul.f32 %v4379_v29, %v2273_v30  ;;  %v5182_v29 = vld [vmem:[%s6345_s5 + $0x60] sm:$0xff]   ;;  %v5183_v30 = vld [vmem:[%s6343_s29 + $0x78] sm:$0xff]  }
 0x764   : > { %v2287_v33 = vadd.f32 %v4380_v31, %v2280_v32  ;;  %v5184_v31 = vld [vmem:[%s6345_s5 + $0x68] sm:$0xff]   ;;  %v5185_v32 = vld [vmem:[%s6345_s5 + $0x50] sm:$0xff]  }
 0x766   : > { %v2288_v34 = vpack.c.bf16 %v2287_v33, %v2287_v33 }
 0x768   : > { %4875 = vmatmul.mubr.msk.bf16.vlgmr.msra.gmra.mrb[48].mxu0 %vm814_vm0, %v2288_v34  ;;  %v5187_v34 = vld [vmem:[%s6345_s5 + $0x70] sm:$0xff]  }
 0x769   : > { %4894 = vmatprep.mubr.msk.bf16.mxu0 %vm5312_vm1, %v5311_v13  ;;  %4891 = vmatpush3.bf16.msra.mxu0 %v5165_v2 }
 0x76a   : > { %4892 = vmatprep.subr.bf16.mxu0 %v5311_v13 }
 0x76d   : > { %4893 = vmatpush3.bf16.msra.mxu0 %v5167_v4 }
 0x76e   : > { %4898 = vmatprep.subr.bf16.mxu0 %v5311_v13 }
 0x83b   : > { %v2349_v40 = vpop.f32.mrb[48].mxu0 }
 0x83c   : > { %v2350_v41 = vadd.f32 %v4381_v39, %v2349_v40  ;;  %v4876_v42 = vpop.f32.mrb[49].mxu0 }
 0x83d   : > { %v2352_v43 = vpop.f32.mrb[50].mxu0 }
 0x83e   : > { %v2356_v44 = vmul.f32 0.70710677, %v2350_v41  ;;  %v4877_v45 = vpop.f32.mrb[51].mxu0  ;;  %v2355_v47 = vmul.f32 0.5, %v2350_v41 }
 0x840   : > { %5219 = verf.f32 %v2356_v44  ;;  %v4449_v44 = vld [vmem:[%s6347_s1 + $0x4] ss:$0 sm:$0xff] }
 0x84a   : > { %v5220_v46 = vpop.eup %5219 }
 0x84b   : > { %v2358_v48 = vadd.f32 1.0, %v5220_v46 }
 0x84d   : > { %v2359_v49 = vmul.f32 %v2358_v48, %v2355_v47 }
 0x84f   : > { %v2360_v50 = vpack.c.bf16 %v2359_v49, %v2359_v49 }
 0x851   : > { %4887 = vmatmul.mubr.msk.bf16.vlgmr.msra.gmra.mrb[48].mxu1 %vm2400_vm4, %v2360_v50 }
 0x852   : > { %4910 = vmatprep.mubr.msk.bf16.mxu1 %vm5312_vm1, %v5311_v13  ;;  %4907 = vmatpush3.bf16.msra.mxu1 %v5166_v3 }
 0x853   : > { %4908 = vmatprep.subr.bf16.mxu1 %v5311_v13 }
 0x856   : > { %4909 = vmatpush3.bf16.msra.mxu1 %v5168_v5 }
 0x857   : > { %4922 = vmatprep.subr.bf16.mxu1 %v5311_v13 }
 0x924   : > { %v2438_v52 = vpop.f32.mrb[48].mxu1 }
 0x925   : > { %v2439_v53 = vadd.f32 %v4385_v51, %v2438_v52  ;;  %v4888_v54 = vpop.f32.mrb[49].mxu1 }
 0x926   : > { %v2441_v55 = vpop.f32.mrb[50].mxu1 }
 0x927   : > { %v4889_v56 = vpop.f32.mrb[51].mxu1  ;;  %v2444_v57 = vadd.f32 %v2439_v53, %v2287_v33  ;;  %v5186_v33 = vld [vmem:[%s6345_s5 + $0x58] sm:$0xff]   ;;  %v4413_v55 = vld [vmem:[%s6349_s26 + $0x4] ss:$0 sm:$0xff] }
 0x929   : > { %v2447_v58 = vsel %vm814_vm0, %v2444_v57, 0.0 }
 0x92a   : > { %2448 = vadd.xlane.f32.xlu0 %v2447_v58 }
 0x9b7   : > { %v2449_v59 = vpop.xlane.xlu0 %2448 }
 0x9b8   : > { %v2450_v62 = vmul.f32 0.03125, %v2449_v59 }
 0x9ba   : > { %v2451_v63 = vsub.f32 %v2444_v57, %v2450_v62  ;;  %v4451_v57 = vld [vmem:[%s6347_s1 + $0x6] ss:$0 sm:$0xff] }
 0x9bc   : > { %v2452_v0 = vmul.f32 %v2451_v63, %v2451_v63 }
 0x9be   : > { %v2453_v1 = vsel %vm814_vm0, %v2452_v0, 0.0 }
 0x9bf   : > { %2454 = vadd.xlane.f32.xlu1 %v2453_v1 }
 0xa4c   : > { %v2455_v6 = vpop.xlane.xlu1 %2454 }
 0xa4d   : > { %v2456_v7 = vmul.f32 0.03125, %v2455_v6 }
 0xa4f   : > { %v2457_v8 = vadd.f32 1e-12, %v2456_v7 }
 0xa51   : > { %5221 = vrsqrt.f32 %v2457_v8  ;;  %v4415_v8 = vld [vmem:[%s6349_s26 + $0x6] ss:$0 sm:$0xff] }
 0xa5b   : > { %v5222_v9 = vpop.eup %5221 }
 0xa5c   : > { %v2459_v12 = vmul.f32 %v5222_v9, %v2451_v63 }
 0xa5e   : > { %v2466_v15 = vmul.f32 %v4391_v10, %v2459_v12  ;;  %v4450_v10 = vld [vmem:[%s6347_s1 + $0x5] ss:$0 sm:$0xff]  ;;  %v4485_v12 = vld [vmem:[%s6283_s11 + $0x4] ss:$0 sm:$0xff] }
 0xa60   : > { %v5883_v16 = vadd.f32 %v4392_v14, %v2466_v15 }
 0xa62   : > { %v5893_v18 = vpack.c.bf16 %v5883_v16, %v5883_v16 }
 0xa64   : > { %4895 = vmatmul.mubr.msk.bf16.vlgmr.msra.gmra.mrb[52].mxu0 %vm814_vm0, %v5893_v18  ;;  %4911 = vmatmul.mubr.msk.bf16.vlgmr.msra.gmra.mrb[52].mxu1 %vm814_vm0, %v5893_v18 }
 0xa65   : > { %4899 = vmatpush3.bf16.msra.mxu0 %v5169_v17  ;;  %4923 = vmatpush3.bf16.msra.mxu1 %v5170_v60 }
 0xa66   : > { %4900 = vmatprep.subr.bf16.mxu0 %v5311_v13  ;;  %4924 = vmatprep.subr.bf16.mxu1 %v5311_v13 }
 0xa67   : > { %4902 = vmatprep.mubr.msk.bf16.mxu0 %vm5312_vm1, %v5311_v13  ;;  %4926 = vmatprep.mubr.msk.bf16.mxu1 %vm5312_vm1, %v5311_v13 }
 0xa69   : > { %4901 = vmatpush3.bf16.msra.mxu0 %v5171_v61  ;;  %4925 = vmatpush3.bf16.msra.mxu1 %v5172_v19 }
 0xa6a   : > { %4914 = vmatprep.subr.bf16.mxu0 %v5311_v13  ;;  %4938 = vmatprep.subr.bf16.mxu1 %v5311_v13 }
 0xa6c   : > { %4903 = vmatmul.mubr.msk.bf16.vlgmr.msra.gmra.mrb[56].mxu0 %vm814_vm0, %v5893_v18  ;;  %4927 = vmatmul.mubr.msk.bf16.vlgmr.msra.gmra.mrb[56].mxu1 %vm814_vm0, %v5893_v18 }
 0xa6d   : > { %4915 = vmatpush3.bf16.msra.mxu0 %v5173_v20  ;;  %4939 = vmatpush3.bf16.msra.mxu1 %v5174_v21 }
 0xa6e   : > { %4916 = vmatprep.subr.bf16.mxu0 %v5311_v13  ;;  %4940 = vmatprep.subr.bf16.mxu1 %v5311_v13 }
 0xa6f   : > { %4918 = vmatprep.mubr.msk.bf16.mxu0 %vm5312_vm1, %v5311_v13  ;;  %4942 = vmatprep.mubr.msk.bf16.mxu1 %vm5312_vm1, %v5311_v13 }
 0xa71   : > { %4917 = vmatpush3.bf16.msra.mxu0 %v5175_v22  ;;  %4941 = vmatpush3.bf16.msra.mxu1 %v5176_v23 }
 0xa72   : > { %4930 = vmatprep.subr.bf16.mxu0 %v5311_v13  ;;  %4954 = vmatprep.subr.bf16.mxu1 %v5311_v13 }
 0xa74   : > { %4919 = vmatmul.mubr.msk.bf16.vlgmr.msra.gmra.mrb[60].mxu0 %vm814_vm0, %v5893_v18  ;;  %4943 = vmatmul.mubr.msk.bf16.vlgmr.msra.gmra.mrb[60].mxu1 %vm814_vm0, %v5893_v18 }
 0xa75   : > { %4931 = vmatpush3.bf16.msra.mxu0 %v5177_v25  ;;  %4955 = vmatpush3.bf16.msra.mxu1 %v5178_v24 }
 0xa76   : > { %4932 = vmatprep.subr.bf16.mxu0 %v5311_v13  ;;  %4956 = vmatprep.subr.bf16.mxu1 %v5311_v13 }
 0xa77   : > { %4934 = vmatprep.mubr.msk.bf16.mxu0 %vm5312_vm1, %v5311_v13  ;;  %4958 = vmatprep.mubr.msk.bf16.mxu1 %vm5312_vm1, %v5311_v13 }
 0xa79   : > { %4933 = vmatpush3.bf16.msra.mxu0 %v5179_v26  ;;  %4957 = vmatpush3.bf16.msra.mxu1 %v5180_v27  ;;  %v4414_v27 = vld [vmem:[%s6349_s26 + $0x5] ss:$0 sm:$0xff] }
 0xa7a   : > { %4946 = vmatprep.subr.bf16.mxu0 %v5311_v13  ;;  %4970 = vmatprep.subr.bf16.mxu1 %v5311_v13 }
 0xa7c   : > { %4935 = vmatmul.mubr.msk.bf16.vlgmr.msra.gmra.mrb[64].mxu0 %vm814_vm0, %v5893_v18  ;;  %4959 = vmatmul.mubr.msk.bf16.vlgmr.msra.gmra.mrb[64].mxu1 %vm814_vm0, %v5893_v18 }
 0xa7d   : > { %4947 = vmatpush3.bf16.msra.mxu0 %v5181_v28  ;;  %4971 = vmatpush3.bf16.msra.mxu1 %v5182_v29 }
 0xa7e   : > { %4948 = vmatprep.subr.bf16.mxu0 %v5311_v13  ;;  %4972 = vmatprep.subr.bf16.mxu1 %v5311_v13 }
 0xa7f   : > { %4950 = vmatprep.mubr.msk.bf16.mxu0 %vm5312_vm1, %v5311_v13  ;;  %4974 = vmatprep.mubr.msk.bf16.mxu1 %vm5312_vm1, %v5311_v13 }
 0xa81   : > { %4949 = vmatpush3.bf16.msra.mxu0 %v5183_v30  ;;  %4973 = vmatpush3.bf16.msra.mxu1 %v5184_v31  ;;  %v4452_v30 = vld [vmem:[%s6347_s1 + $0x7] ss:$0 sm:$0xff]  ;;  %s6353_s1 = sld [smem:[#allocation24_spill]] }
 0xa82   : > { %4962 = vmatprep.subr.bf16.mxu0 %v5311_v13  ;;  %4986 = vmatprep.subr.bf16.mxu1 %v5311_v13 }
 0xa84   : > { %4951 = vmatmul.mubr.msk.bf16.vlgmr.msra.gmra.mrb[68].mxu0 %vm814_vm0, %v5893_v18  ;;  %4975 = vmatmul.mubr.msk.bf16.vlgmr.msra.gmra.mrb[68].mxu1 %vm814_vm0, %v5893_v18 }
 0xa85   : > { %4963 = vmatpush3.bf16.msra.mxu0 %v5185_v32  ;;  %4966 = vmatprep.mubr.msk.bf16.mxu0 %vm5312_vm1, %v5311_v13 }
 0xa86   : > { %4964 = vmatprep.subr.bf16.mxu0 %v5311_v13  ;;  %4988 = vmatprep.mubr.msk.bf16.mxu1 %vm5312_vm1, %v5311_v13 }
 0xa87   : > { %s6230_s5 = scalar_lea.hbm %s6353_s1, %s4557_s9 }
 0xa89   : > { %4965 = vmatpush3.bf16.msra.mxu0 %v5186_v33 }
 0xa8a   : > { %4978 = vmatprep.subr.bf16.mxu0 %v5311_v13 }
 0xa8c   : > { %4967 = vmatmul.mubr.msk.bf16.vlgmr.msra.gmra.mrb[72].mxu0 %vm814_vm0, %v5893_v18 }
 0xa8d   : > { %4979 = vmatpush3.bf16.msra.mxu0 %v5187_v34  ;;  %4982 = vmatprep.mubr.msk.bf16.mxu0 %vm5312_vm1, %v5311_v13 }
 0xa8e   : > { %4980 = vmatprep.subr.bf16.mxu0 %v5311_v13 }
 0xa91   : > { %4981 = vmatpush3.bf16.msra.mxu0 %v5188_v35 }
 0xa92   : > { %4992 = vmatprep.subr.bf16.mxu0 %v5311_v13 }
 0xa94   : > { %4983 = vmatmul.mubr.msk.bf16.vlgmr.msra.gmra.mrb[76].mxu0 %vm814_vm0, %v5893_v18 }
 0xa95   : > { %4994 = vmatprep.mubr.msk.bf16.mxu0 %vm5312_vm1, %v5311_v13 }
 0xb37   : > { %v2570_v36 = vpop.f32.mrb[52].mxu0  ;;  %v2674_v37 = vpop.f32.mrb[52].mxu1 }
 0xb38   : > { %v4896_v38 = vpop.f32.mrb[53].mxu0  ;;  %v4912_v39 = vpop.f32.mrb[53].mxu1  ;;  %v2571_v58 = vadd.f32 %v4413_v55, %v2570_v36  ;;  %v2675_v14 = vadd.f32 %v4415_v8, %v2674_v37 }
 0xb39   : > { %v2573_v40 = vpop.f32.mrb[54].mxu0  ;;  %v2677_v41 = vpop.f32.mrb[54].mxu1 }
 0xb3a   : > { %v4897_v42 = vpop.f32.mrb[55].mxu0  ;;  %v4913_v43 = vpop.f32.mrb[55].mxu1  ;;  %v3240_v4 = vpack.c.bf16 %v2571_v58, %v2571_v58  ;;  %v3242_v22 = vpack.c.bf16 %v2675_v14, %v2675_v14 }
 0xb3b   : > { %v4416_v43 = vld [vmem:[%s6349_s26 + $0x7] ss:$0 sm:$0xff] }
 0xb3f   : > { %v2622_v45 = vpop.f32.mrb[56].mxu0  ;;  %v2824_v46 = vpop.f32.mrb[56].mxu1 }
 0xb40   : > { %v2825_v47 = vadd.f32 %v4449_v44, %v2824_v46  ;;  %v4904_v48 = vpop.f32.mrb[57].mxu0  ;;  %v4928_v49 = vpop.f32.mrb[57].mxu1  ;;  %v2623_v31 = vadd.f32 %v4414_v27, %v2622_v45  ;;  %v4486_v45 = vld [vmem:[%s6283_s11 + $0x5] ss:$0 sm:$0xff] }
 0xb41   : > { %v2625_v50 = vpop.f32.mrb[58].mxu0  ;;  %v2827_v51 = vpop.f32.mrb[58].mxu1 }
 0xb42   : > { %v3244_v52 = vpack.c.bf16 %v2825_v47, %v2825_v47  ;;  %v4905_v53 = vpop.f32.mrb[59].mxu0  ;;  %v4929_v54 = vpop.f32.mrb[59].mxu1  ;;  %v3241_v39 = vpack.c.bf16 %v2623_v31, %v2623_v31 }
 0xb44   : > { %v3252_v56 = vsel %vm1615_vm2, %v3244_v52, 0 }
 0xb45   : > { %4987 = vmatpush3.bf16.xpose.msra.mxu1 %v3252_v56 }
 0xb46   : > { %4998 = vmatprep.subr.bf16.mxu1 %v5311_v13 }
 0xb47   : > { %v2726_v59 = vpop.f32.mrb[60].mxu0  ;;  %v2928_v62 = vpop.f32.mrb[60].mxu1 }
 0xb48   : > { %v2929_v63 = vadd.f32 %v4451_v57, %v2928_v62  ;;  %v4920_v0 = vpop.f32.mrb[61].mxu0  ;;  %v4944_v1 = vpop.f32.mrb[61].mxu1  ;;  %v2727_v46 = vadd.f32 %v4416_v43, %v2726_v59 }
 0xb49   : > { %v2729_v2 = vpop.f32.mrb[62].mxu0  ;;  %v2931_v3 = vpop.f32.mrb[62].mxu1 }
 0xb4a   : > { %v3246_v5 = vpack.c.bf16 %v2929_v63, %v2929_v63  ;;  %v4921_v6 = vpop.f32.mrb[63].mxu0  ;;  %v4945_v7 = vpop.f32.mrb[63].mxu1  ;;  %v3243_v51 = vpack.c.bf16 %v2727_v46, %v2727_v46 }
 0xb4c   : > { %v3344_v9 = vsel %vm1615_vm2, %v3246_v5, 0  ;;  %4989 = vmatmul.mubr.msk.bf16.vlgmr.msra.gmra.mrb[72].mxu1 %vm1615_vm2, %v3240_v4 }
 0xb4d   : > { %4999 = vmatpush3.bf16.xpose.msra.mxu1 %v3344_v9  ;;  %5000 = vmatprep.mubr.msk.bf16.mxu1 %vm5312_vm1, %v5311_v13 }
 0xb4e   : > { %5010 = vmatprep.subr.bf16.mxu1 %v5311_v13 }
 0xb4f   : > { %v2876_v15 = vpop.f32.mrb[64].mxu0  ;;  %v3078_v17 = vpop.f32.mrb[64].mxu1 }
 0xb50   : > { %v2877_v60 = vadd.f32 %v4450_v10, %v2876_v15  ;;  %v3079_v18 = vadd.f32 %v4485_v12, %v3078_v17  ;;  %v4936_v61 = vpop.f32.mrb[65].mxu0  ;;  %v4960_v19 = vpop.f32.mrb[65].mxu1 }
 0xb51   : > { %v2879_v20 = vpop.f32.mrb[66].mxu0  ;;  %v3081_v21 = vpop.f32.mrb[66].mxu1 }
 0xb52   : > { %v3245_v23 = vpack.c.bf16 %v2877_v60, %v2877_v60  ;;  %v3488_v25 = vpack.c.bf16 %v3079_v18, %v3079_v18  ;;  %v4937_v24 = vpop.f32.mrb[67].mxu0  ;;  %v4961_v26 = vpop.f32.mrb[67].mxu1 }
 0xb54   : > { %v3298_v28 = vsel %vm1615_vm2, %v3245_v23, 0  ;;  %v3496_v29 = vsel %vm1869_vm3, %v3488_v25, 0  ;;  %5001 = vmatmul.mubr.msk.bf16.vlgmr.msra.gmra.mrb[76].mxu1 %vm1615_vm2, %v3242_v22 }
 0xb55   : > { %4993 = vmatpush3.bf16.xpose.msra.mxu0 %v3298_v28  ;;  %5011 = vmatpush3.bf16.msra.mxu1 %v3496_v29 }
 0xb56   : > { %5004 = vmatprep.subr.bf16.mxu0 %v5311_v13  ;;  %5012 = vmatprep.mubr.msk.bf16.mxu1 %vm5312_vm1, %v5311_v13 }
 0xb57   : > { %v2980_v32 = vpop.f32.mrb[68].mxu0  ;;  %v6054_v33 = vpop.f32.mrb[68].mxu1  ;;  %5022 = vmatprep.subr.bf16.mxu1 %v5311_v13 }
 0xb58   : > { %v2981_v34 = vadd.f32 %v4452_v30, %v2980_v32  ;;  %v4952_v35 = vpop.f32.mrb[69].mxu0  ;;  %v4976_v36 = vpop.f32.mrb[69].mxu1 }
 0xb59   : > { %v2983_v37 = vpop.f32.mrb[70].mxu0  ;;  %v3185_v38 = vpop.f32.mrb[70].mxu1 }
 0xb5a   : > { %v3247_v40 = vpack.c.bf16 %v2981_v34, %v2981_v34  ;;  %v4953_v41 = vpop.f32.mrb[71].mxu0  ;;  %v4977_v42 = vpop.f32.mrb[71].mxu1 }
 0xb5c   : > { %v3390_v44 = vsel %vm1615_vm2, %v3247_v40, 0  ;;  %4995 = vmatmul.mubr.msk.bf16.vlgmr.msra.gmra.mrb[80].mxu0 %vm1615_vm2, %v3241_v39 }
 0xb5d   : > { %5005 = vmatpush3.bf16.xpose.msra.mxu0 %v3390_v44  ;;  %5006 = vmatprep.mubr.msk.bf16.mxu0 %vm5312_vm1, %v5311_v13 }
 0xb5e   : > { %5016 = vmatprep.subr.bf16.mxu0 %v5311_v13 }
 0xb5f   : > { %v3130_v47 = vpop.f32.mrb[72].mxu0 }
 0xb60   : > { %v3131_v48 = vadd.f32 %v4486_v45, %v3130_v47  ;;  %v4968_v49 = vpop.f32.mrb[73].mxu0  ;;  %v4487_v47 = vld [vmem:[%s6283_s11 + $0x6] ss:$0 sm:$0xff] }
 0xb61   : > { %v3133_v50 = vpop.f32.mrb[74].mxu0 }
 0xb62   : > { %v3489_v52 = vpack.c.bf16 %v3131_v48, %v3131_v48  ;;  %v4969_v53 = vpop.f32.mrb[75].mxu0  ;;  %v3183_v48 = vadd.f32 %v4487_v47, %v6054_v33 }
 0xb64   : > { %v3542_v54 = vsel %vm1869_vm3, %v3489_v52, 0  ;;  %5007 = vmatmul.mubr.msk.bf16.vlgmr.msra.gmra.mrb[84].mxu0 %vm1615_vm2, %v3243_v51  ;;  %v3490_v51 = vpack.c.bf16 %v3183_v48, %v3183_v48 }
 0xb65   : > { %5017 = vmatpush3.bf16.msra.mxu0 %v3542_v54  ;;  %5018 = vmatprep.mubr.msk.bf16.mxu0 %vm5312_vm1, %v5311_v13 }
 0xb66   : > { %5028 = vmatprep.subr.bf16.mxu0 %v5311_v13  ;;  %v3588_v54 = vsel %vm1869_vm3, %v3490_v51, 0 }
 0xb67   : > { %v6073_v55 = vpop.f32.mrb[76].mxu0 }
 0xb68   : > { %v4984_v56 = vpop.f32.mrb[77].mxu0 }
 0xb69   : > { %v3237_v57 = vpop.f32.mrb[78].mxu0 }
 0xb6a   : > { %v4985_v58 = vpop.f32.mrb[79].mxu0 }
 0xb6b   : > { %v4488_v58 = vld [vmem:[%s6283_s11 + $0x7] ss:$0 sm:$0xff] }
 0xc1f   : > { %v3288_v59 = vpop.f32.mrb[72].mxu1 }
 0xc20   : > { %v3432_v62 = vmul.f32 0.35355338, %v3288_v59  ;;  %v4990_v63 = vpop.f32.mrb[73].mxu1 }
 0xc21   : > { %v3291_v0 = vpop.f32.mrb[74].mxu1 }
 0xc22   : > { %v4991_v1 = vpop.f32.mrb[75].mxu1  ;;  %v3436_v2 = vadd.f32 %v3432_v62, %v5737_v11  ;;  %v3235_v62 = vadd.f32 %v4488_v58, %v6073_v55 }
 0xc24   : > { %v3440_v3 = vsel %vm1615_vm2, %v3436_v2, -inf  ;;  %v3491_v1 = vpack.c.bf16 %v3235_v62, %v3235_v62 }
 0xc25   : > { %3441 = vmax.xlane.f32.xlu0 %v3440_v3 }
 0xc27   : > { %v3380_v4 = vpop.f32.mrb[76].mxu1 }
 0xc28   : > { %v3434_v5 = vmul.f32 0.35355338, %v3380_v4  ;;  %v5002_v6 = vpop.f32.mrb[77].mxu1  ;;  %v3634_v4 = vsel %vm1869_vm3, %v3491_v1, 0 }
 0xc29   : > { %v3383_v7 = vpop.f32.mrb[78].mxu1 }
 0xc2a   : > { %v5003_v8 = vpop.f32.mrb[79].mxu1  ;;  %v3438_v9 = vadd.f32 %v3434_v5, %v5737_v11  ;;  %v4509_v7 = vld [vmem:[%s6284_s12 + $0x10] sm:$0xf] }
 0xc2b   : > { %v3689_v8 = vsel %vm1869_vm3, %v4509_v7, 0 }
 0xc2c   : > { %v3446_v10 = vsel %vm1615_vm2, %v3438_v9, -inf }
 0xc2d   : > { %3447 = vmax.xlane.f32.xlu0 %v3446_v10 }
 0xc2f   : > { %v3334_v12 = vpop.f32.mrb[80].mxu0 }
 0xc30   : > { %v3433_v14 = vmul.f32 0.35355338, %v3334_v12  ;;  %v4996_v15 = vpop.f32.mrb[81].mxu0  ;;  %v4511_v12 = vld [vmem:[%s6284_s12 + $0x18] sm:$0xf] }
 0xc31   : > { %v3337_v17 = vpop.f32.mrb[82].mxu0 }
 0xc32   : > { %v4997_v60 = vpop.f32.mrb[83].mxu0  ;;  %v3437_v18 = vadd.f32 %v3433_v14, %v5737_v11 }
 0xc33   : > { %v3781_v60 = vsel %vm1869_vm3, %v4511_v12, 0 }
 0xc34   : > { %v3443_v61 = vsel %vm1615_vm2, %v3437_v18, -inf }
 0xc35   : > { %3444 = vmax.xlane.f32.xlu1 %v3443_v61 }
 0xc37   : > { %v3426_v19 = vpop.f32.mrb[84].mxu0 }
 0xc38   : > { %v3435_v20 = vmul.f32 0.35355338, %v3426_v19  ;;  %v5008_v21 = vpop.f32.mrb[85].mxu0 }
 0xc39   : > { %v3429_v22 = vpop.f32.mrb[86].mxu0 }
 0xc3a   : > { %v5009_v23 = vpop.f32.mrb[87].mxu0  ;;  %v3439_v25 = vadd.f32 %v3435_v20, %v5737_v11 }
 0xc3c   : > { %v3449_v24 = vsel %vm1615_vm2, %v3439_v25, -inf }
 0xc3d   : > { %3450 = vmax.xlane.f32.xlu1 %v3449_v24 }
 0xcb2   : > { %v3442_v26 = vpop.xlane.xlu0 %3441 }
 0xcb3   : > { %v3452_v27 = vsub.f32 %v3436_v2, %v3442_v26 }
 0xcb5   : > { %v3456_v28 = vmul.f32 1.442695, %v3452_v27 }
 0xcb7   : > { %5223 = vpow2.f32 %v3456_v28 }
 0xcba   : > { %v3448_v29 = vpop.xlane.xlu0 %3447 }
 0xcbb   : > { %v3454_v30 = vsub.f32 %v3438_v9, %v3448_v29  ;;  %v4510_v9 = vld [vmem:[%s6284_s12 + $0x14] sm:$0xf] }
 0xcbc   : > { %v3735_v10 = vsel %vm1869_vm3, %v4510_v9, 0 }
 0xcbd   : > { %v3460_v31 = vmul.f32 1.442695, %v3454_v30 }
 0xcbf   : > { %5225 = vpow2.f32 %v3460_v31 }
 0xcc1   : > { %v5224_v32 = vpop.eup %5223 }
 0xcc2   : > { %v3445_v34 = vpop.xlane.xlu1 %3444  ;;  %v3464_v35 = vsel %vm1615_vm2, %v5224_v32, 0.0 }
 0xcc3   : > { %v3453_v36 = vsub.f32 %v3437_v18, %v3445_v34  ;;  %3465 = vadd.xlane.f32.xlu0 %v3464_v35 }
 0xcc5   : > { %v3458_v37 = vmul.f32 1.442695, %v3453_v36 }
 0xcc7   : > { %5227 = vpow2.f32 %v3458_v37 }
 0xcc9   : > { %v5226_v11 = vpop.eup %5225 }
 0xcca   : > { %v3451_v38 = vpop.xlane.xlu1 %3450  ;;  %v3470_v39 = vsel %vm1615_vm2, %v5226_v11, 0.0 }
 0xccb   : > { %v3455_v40 = vsub.f32 %v3439_v25, %v3451_v38  ;;  %3471 = vadd.xlane.f32.xlu0 %v3470_v39  ;;  %v4512_v25 = vld [vmem:[%s6284_s12 + $0x1c] sm:$0xf] }
 0xccc   : > { %v3827_v28 = vsel %vm1869_vm3, %v4512_v25, 0 }
 0xccd   : > { %v3462_v41 = vmul.f32 1.442695, %v3455_v40 }
 0xccf   : > { %5229 = vpow2.f32 %v3462_v41 }
 0xcd1   : > { %v5228_v42 = vpop.eup %5227 }
 0xcd2   : > { %v3467_v43 = vsel %vm1615_vm2, %v5228_v42, 0.0 }
 0xcd3   : > { %3468 = vadd.xlane.f32.xlu1 %v3467_v43 }
 0xcd9   : > { %v5230_v44 = vpop.eup %5229 }
 0xcda   : > { %v3473_v45 = vsel %vm1615_vm2, %v5230_v44, 0.0 }
 0xcdb   : > { %3474 = vadd.xlane.f32.xlu1 %v3473_v45 }
 0xd50   : > { %v3466_v46 = vpop.xlane.xlu0 %3465 }
 0xd51   : > { %5231 = vrcp.f32 %v3466_v46 }
 0xd58   : > { %v3472_v49 = vpop.xlane.xlu0 %3471 }
 0xd59   : > { %5233 = vrcp.f32 %v3472_v49 }
 0xd5b   : > { %v5232_v50 = vpop.eup %5231 }
 0xd5c   : > { %v3480_v52 = vmul.f32 %v5232_v50, %v5224_v32 }
 0xd5e   : > { %v3484_v53 = vpack.c.bf16 %v3480_v52, %v3480_v52 }
 0xd60   : > { %v3469_v56 = vpop.xlane.xlu1 %3468  ;;  %5013 = vmatmul.mubr.msk.bf16.vlgmr.msra.gmra.mrb[80].mxu1 %vm1615_vm2, %v3484_v53 }
 0xd61   : > { %5235 = vrcp.f32 %v3469_v56  ;;  %5023 = vmatpush3.bf16.msra.mxu1 %v3588_v54  ;;  %5024 = vmatprep.mubr.msk.bf16.mxu1 %vm5312_vm1, %v5311_v13  ;;  %v4518_v56 = vld [vmem:[%s6285_s13 + $0x1] ss:$0 sm:$0xff] }
 0xd62   : > { %5034 = vmatprep.subr.bf16.mxu1 %v5311_v13 }
 0xd63   : > { %v5234_v57 = vpop.eup %5233 }
 0xd64   : > { %v3482_v33 = vmul.f32 %v5234_v57, %v5226_v11 }
 0xd66   : > { %v3486_v59 = vpack.c.bf16 %v3482_v33, %v3482_v33 }
 0xd68   : > { %v3475_v63 = vpop.xlane.xlu1 %3474  ;;  %5025 = vmatmul.mubr.msk.bf16.vlgmr.msra.gmra.mrb[84].mxu1 %vm1615_vm2, %v3486_v59 }
 0xd69   : > { %5237 = vrcp.f32 %v3475_v63  ;;  %5036 = vmatprep.mubr.msk.bf16.mxu1 %vm5312_vm1, %v5311_v13  ;;  %5035 = vmatpush3.bf16.msra.mxu1 %v3689_v8 }
 0xd6a   : > { %5046 = vmatprep.subr.bf16.mxu1 %v5311_v13 }
 0xd6b   : > { %v5236_v0 = vpop.eup %5235 }
 0xd6c   : > { %v3481_v2 = vmul.f32 %v5236_v0, %v5228_v42 }
 0xd6e   : > { %v3485_v3 = vpack.c.bf16 %v3481_v2, %v3481_v2 }
 0xd70   : > { %5019 = vmatmul.mubr.msk.bf16.vlgmr.msra.gmra.mrb[88].mxu0 %vm1615_vm2, %v3485_v3 }
 0xd71   : > { %5029 = vmatpush3.bf16.msra.mxu0 %v3634_v4  ;;  %5030 = vmatprep.mubr.msk.bf16.mxu0 %vm5312_vm1, %v5311_v13 }
 0xd72   : > { %5040 = vmatprep.subr.bf16.mxu0 %v5311_v13 }
 0xd73   : > { %v5238_v55 = vpop.eup %5237 }
 0xd74   : > { %v3483_v5 = vmul.f32 %v5238_v55, %v5230_v44 }
 0xd76   : > { %v3487_v6 = vpack.c.bf16 %v3483_v5, %v3483_v5  ;;  %v5189_v5 = vld [vmem:[%s6288_s16 + $0x10] sm:$0xff]  }
 0xd78   : > { %5031 = vmatmul.mubr.msk.bf16.vlgmr.msra.gmra.mrb[92].mxu0 %vm1615_vm2, %v3487_v6  ;;  %v5190_v6 = vld [vmem:[%s6288_s16 + $0x18] sm:$0xff]  }
 0xd79   : > { %5042 = vmatprep.mubr.msk.bf16.mxu0 %vm5312_vm1, %v5311_v13  ;;  %5041 = vmatpush3.bf16.msra.mxu0 %v3735_v10  ;;  %v4521_v10 = vld [vmem:[%s6286_s14 + $0x1] ss:$0 sm:$0xff] }
 0xd7a   : > { %5052 = vmatprep.subr.bf16.mxu0 %v5311_v13 }
 0xe33   : > { %v3532_v14 = vpop.f32.mrb[80].mxu1 }
 0xe34   : > { %v3676_v15 = vpack.c.bf16 %v3532_v14, %v3532_v14  ;;  %v5014_v17 = vpop.f32.mrb[81].mxu1  ;;  %v4522_v14 = vld [vmem:[%s6287_s15 + $0x1] ss:$0 sm:$0xff] }
 0xe35   : > { %v3535_v18 = vpop.f32.mrb[82].mxu1 }
 0xe36   : > { %v5015_v61 = vpop.f32.mrb[83].mxu1  ;;  %5037 = vmatmul.mubr.msk.bf16.vlgmr.msra.gmra.mrb[88].mxu1 %vm1615_vm2, %v3676_v15  ;;  %v5191_v18 = vld [vmem:[%s6290_s18 + $0x20] sm:$0xff]  }
 0xe37   : > { %5047 = vmatpush3.bf16.msra.mxu1 %v3781_v60  ;;  %5048 = vmatprep.mubr.msk.bf16.mxu1 %vm5312_vm1, %v5311_v13  ;;  %v5192_v61 = vld [vmem:[%s6290_s18 + $0x28] sm:$0xff]  }
 0xe38   : > { %5058 = vmatprep.subr.bf16.mxu1 %v5311_v13 }
 0xe3b   : > { %v3624_v19 = vpop.f32.mrb[84].mxu1 }
 0xe3c   : > { %v3678_v20 = vpack.c.bf16 %v3624_v19, %v3624_v19  ;;  %v5026_v21 = vpop.f32.mrb[85].mxu1  ;;  %v5193_v19 = vld [vmem:[%s6290_s18 + $0x30] sm:$0xff]  }
 0xe3d   : > { %v3627_v22 = vpop.f32.mrb[86].mxu1  ;;  %v4528_v21 = vld [vmem:[%s6289_s17 + $0x1] ss:$0 sm:$0xff] }
 0xe3e   : > { %v5027_v23 = vpop.f32.mrb[87].mxu1  ;;  %5049 = vmatmul.mubr.msk.bf16.vlgmr.msra.gmra.mrb[92].mxu1 %vm1615_vm2, %v3678_v20  ;;  %v5194_v20 = vld [vmem:[%s6290_s18 + $0x38] sm:$0xff]  }
 0xe3f   : > { %5062 = vmatprep.mubr.msk.bf16.mxu1 %vm5312_vm1, %v5311_v13  ;;  %5059 = vmatpush3.bf16.msra.mxu1 %v5189_v5 }
 0xe40   : > { %5060 = vmatprep.subr.bf16.mxu1 %v5311_v13 }
 0xe43   : > { %v3578_v24 = vpop.f32.mrb[88].mxu0  ;;  %5061 = vmatpush3.bf16.msra.mxu1 %v5190_v6 }
 0xe44   : > { %v3677_v26 = vpack.c.bf16 %v3578_v24, %v3578_v24  ;;  %v5020_v27 = vpop.f32.mrb[89].mxu0  ;;  %5078 = vmatprep.subr.bf16.mxu1 %v5311_v13 }
 0xe45   : > { %v3581_v29 = vpop.f32.mrb[90].mxu0 }
 0xe46   : > { %v5021_v30 = vpop.f32.mrb[91].mxu0  ;;  %5043 = vmatmul.mubr.msk.bf16.vlgmr.msra.gmra.mrb[96].mxu0 %vm1615_vm2, %v3677_v26 }
 0xe47   : > { %5053 = vmatpush3.bf16.msra.mxu0 %v3827_v28  ;;  %5054 = vmatprep.mubr.msk.bf16.mxu0 %vm5312_vm1, %v5311_v13 }
 0xe48   : > { %5066 = vmatprep.subr.bf16.mxu0 %v5311_v13 }
 0xe4b   : > { %v3670_v31 = vpop.f32.mrb[92].mxu0 }
 0xe4c   : > { %v3679_v32 = vpack.c.bf16 %v3670_v31, %v3670_v31  ;;  %v5032_v34 = vpop.f32.mrb[93].mxu0 }
 0xe4d   : > { %v3673_v35 = vpop.f32.mrb[94].mxu0  ;;  %v4541_v34 = vld [vmem:[%s6291_s19 + $0x1] ss:$0 sm:$0xff] }
 0xe4e   : > { %v5033_v36 = vpop.f32.mrb[95].mxu0  ;;  %5055 = vmatmul.mubr.msk.bf16.vlgmr.msra.gmra.mrb[100].mxu0 %vm1615_vm2, %v3679_v32 }
 0xe4f   : > { %5074 = vmatprep.mubr.msk.bf16.mxu0 %vm5312_vm1, %v5311_v13  ;;  %5067 = vmatpush3.bf16.msra.mxu0 %v5191_v18 }
 0xe50   : > { %5068 = vmatprep.subr.bf16.mxu0 %v5311_v13 }
 0xe53   : > { %5069 = vmatpush3.bf16.msra.mxu0 %v5192_v61 }
 0xe54   : > { %5070 = vmatprep.subr.bf16.mxu0 %v5311_v13 }
 0xe57   : > { %5071 = vmatpush3.bf16.msra.mxu0 %v5193_v19 }
 0xe58   : > { %5072 = vmatprep.subr.bf16.mxu0 %v5311_v13 }
 0xe5b   : > { %5073 = vmatpush3.bf16.msra.mxu0 %v5194_v20 }
 0xf09   : > { %v3725_v37 = vpop.f32.mrb[88].mxu1 }
 0xf0a   : > { %v5038_v11 = vpop.f32.mrb[89].mxu1  ;;  %v3869_v45 = vsel %vm814_vm0, %v3725_v37, 0.0 }
 0xf0b   : > { %v3728_v38 = vpop.f32.mrb[90].mxu1 }
 0xf0c   : > { %v5039_v39 = vpop.f32.mrb[91].mxu1 }
 0xf11   : > { %v3817_v40 = vpop.f32.mrb[92].mxu1 }
 0xf12   : > { %v5050_v41 = vpop.f32.mrb[93].mxu1  ;;  %v3872_v50 = vsel %vm814_vm0, %v3817_v40, 0.0 }
 0xf13   : > { %v3820_v42 = vpop.f32.mrb[94].mxu1 }
 0xf14   : > { %v5051_v43 = vpop.f32.mrb[95].mxu1 }
 0xf19   : > { %v3771_v44 = vpop.f32.mrb[96].mxu0 }
 0xf1a   : > { %v3870_v46 = vsel %vm814_vm0, %v3771_v44, 0.0  ;;  %v5044_v47 = vpop.f32.mrb[97].mxu0 }
 0xf1b   : > { %v3871_v48 = vadd.f32 %v3870_v46, %v3869_v45  ;;  %v3774_v49 = vpop.f32.mrb[98].mxu0  ;;  %v5195_v46 = vld [vmem:[%s6294_s22] sm:$0xff]   ;;  %v5196_v47 = vld [vmem:[%s6294_s22 + $0x8] sm:$0xff]  }
 0xf1c   : > { %v5045_v51 = vpop.f32.mrb[99].mxu0 }
 0xf1d   : > { %v3873_v52 = vadd.f32 %v3872_v50, %v3871_v48 }
 0xf21   : > { %v3863_v53 = vpop.f32.mrb[100].mxu0 }
 0xf22   : > { %v3874_v54 = vsel %vm814_vm0, %v3863_v53, 0.0  ;;  %v5056_v57 = vpop.f32.mrb[101].mxu0 }
 0xf23   : > { %v3875_v33 = vadd.f32 %v3874_v54, %v3873_v52  ;;  %v3866_v58 = vpop.f32.mrb[102].mxu0  ;;  %v4549_v52 = vld [vmem:[%s6292_s20 + $0x1] ss:$0 sm:$0xff] }
 0xf24   : > { %v5057_v59 = vpop.f32.mrb[103].mxu0  ;;  %v4550_v54 = vld [vmem:[%s6293_s21 + $0x1] ss:$0 sm:$0xff] }
 0xf25   : > { %v3884_v62 = vadd.f32 %v4518_v56, %v3875_v33  ;;  %v5197_v58 = vld [vmem:[%s6296_s24] sm:$0xff]   ;;  %v5198_v59 = vld [vmem:[%s6296_s24 + $0x8] sm:$0xff]  }
 0xf27   : > { %v3885_v63 = vadd.f32 %v3884_v62, %v5883_v16  ;;  %v4113_v62 = vld [vmem:[%s6295_s23] sm:$0x1] }
 0xf29   : > { %v3890_v0 = vsel %vm814_vm0, %v3885_v63, 0.0 }
 0xf2a   : > { %3891 = vadd.xlane.f32.xlu0 %v3890_v0 }
 0xfb7   : > { %v3892_v1 = vpop.xlane.xlu0 %3891 }
 0xfb8   : > { %v3893_v2 = vmul.f32 0.03125, %v3892_v1 }
 0xfba   : > { %v3894_v3 = vsub.f32 %v3885_v63, %v3893_v2 }
 0xfbc   : > { %v3895_v4 = vmul.f32 %v3894_v3, %v3894_v3 }
 0xfbe   : > { %v3896_v55 = vsel %vm814_vm0, %v3895_v4, 0.0 }
 0xfbf   : > { %3897 = vadd.xlane.f32.xlu1 %v3896_v55 }
0x104c   : > { %v3898_v16 = vpop.xlane.xlu1 %3897 }
0x104d   : > { %v3899_v7 = vmul.f32 0.03125, %v3898_v16 }
0x104f   : > { %v3900_v8 = vadd.f32 1e-12, %v3899_v7 }
0x1051   : > { %5239 = vrsqrt.f32 %v3900_v8 }
0x105b   : > { %v5240_v9 = vpop.eup %5239 }
0x105c   : > { %v3902_v12 = vmul.f32 %v5240_v9, %v3894_v3 }
0x105e   : > { %v3909_v15 = vmul.f32 %v4521_v10, %v3902_v12 }
0x1060   : > { %v3916_v17 = vadd.f32 %v4522_v14, %v3909_v15 }
0x1062   : > { %v3917_v60 = vpack.c.bf16 %v3916_v17, %v3916_v17 }
0x1064   : > { %5063 = vmatmul.mubr.msk.bf16.vlgmr.msra.gmra.mrb[96].mxu1 %vm814_vm0, %v3917_v60 }
0x1065   : > { %5082 = vmatprep.mubr.msk.bf16.mxu1 %vm5312_vm1, %v5311_v13  ;;  %5079 = vmatpush3.bf16.msra.mxu1 %v5195_v46 }
0x1066   : > { %5080 = vmatprep.subr.bf16.mxu1 %v5311_v13 }
0x1069   : > { %5081 = vmatpush3.bf16.msra.mxu1 %v5196_v47 }
0x106a   : > { %5086 = vmatprep.subr.bf16.mxu1 %v5311_v13 }
0x1137   : > { %v3980_v22 = vpop.f32.mrb[96].mxu1 }
0x1138   : > { %v3981_v23 = vadd.f32 %v4528_v21, %v3980_v22  ;;  %v5064_v25 = vpop.f32.mrb[97].mxu1 }
0x1139   : > { %v3983_v24 = vpop.f32.mrb[98].mxu1 }
0x113a   : > { %v3987_v26 = vmul.f32 0.70710677, %v3981_v23  ;;  %v5065_v27 = vpop.f32.mrb[99].mxu1  ;;  %v3986_v29 = vmul.f32 0.5, %v3981_v23 }
0x113c   : > { %5241 = verf.f32 %v3987_v26 }
0x1146   : > { %v5242_v28 = vpop.eup %5241 }
0x1147   : > { %v3989_v30 = vadd.f32 1.0, %v5242_v28 }
0x1149   : > { %v3990_v31 = vmul.f32 %v3989_v30, %v3986_v29 }
0x114b   : > { %v3991_v32 = vpack.c.bf16 %v3990_v31, %v3990_v31 }
0x114d   : > { %5075 = vmatmul.mubr.msk.bf16.vlgmr.msra.gmra.mrb[104].mxu0 %vm2400_vm4, %v3991_v32 }
0x1220   : > { %v4070_v35 = vpop.f32.mrb[104].mxu0 }
0x1221   : > { %v4071_v36 = vadd.f32 %v4541_v34, %v4070_v35  ;;  %v5076_v37 = vpop.f32.mrb[105].mxu0 }
0x1222   : > { %v4073_v11 = vpop.f32.mrb[106].mxu0 }
0x1223   : > { %v5077_v38 = vpop.f32.mrb[107].mxu0  ;;  %v4076_v39 = vadd.f32 %v4071_v36, %v3916_v17 }
0x1225   : > { %v4081_v40 = vsel %vm814_vm0, %v4076_v39, 0.0 }
0x1226   : > { %4082 = vadd.xlane.f32.xlu0 %v4081_v40 }
0x12b3   : > { %v4083_v41 = vpop.xlane.xlu0 %4082 }
0x12b4   : > { %v4084_v42 = vmul.f32 0.03125, %v4083_v41 }
0x12b6   : > { %v4085_v43 = vsub.f32 %v4076_v39, %v4084_v42 }
0x12b8   : > { %v4086_v44 = vmul.f32 %v4085_v43, %v4085_v43 }
0x12ba   : > { %v4087_v45 = vsel %vm814_vm0, %v4086_v44, 0.0 }
0x12bb   : > { %4088 = vadd.xlane.f32.xlu1 %v4087_v45 }
0x1348   : > { %v4089_v48 = vpop.xlane.xlu1 %4088 }
0x1349   : > { %v4090_v49 = vmul.f32 0.03125, %v4089_v48 }
0x134b   : > { %v4091_v50 = vadd.f32 1e-12, %v4090_v49 }
0x134d   : > { %5243 = vrsqrt.f32 %v4091_v50 }
0x1357   : > { %v5244_v51 = vpop.eup %5243 }
0x1358   : > { %v4093_v53 = vmul.f32 %v5244_v51, %v4085_v43 }
0x135a   : > { %v4100_v56 = vmul.f32 %v4549_v52, %v4093_v53 }
0x135c   : > { %v4107_v57 = vadd.f32 %v4550_v54, %v4100_v56 }
0x135e   : > { %v4108_v33 = vpack.c.bf16 %v4107_v57, %v4107_v57 }
0x1360   : > { %5083 = vmatmul.mubr.msk.bf16.vlgmr.msra.gmra.mrb[100].mxu1 %vm814_vm0, %v4108_v33 }
0x1361   : > { %5090 = vmatprep.mubr.msk.bf16.mxu1 %vm5312_vm1, %v5311_v13  ;;  %5087 = vmatpush3.bf16.msra.mxu1 %v5197_v58 }
0x1362   : > { %5088 = vmatprep.subr.bf16.mxu1 %v5311_v13  ;;  %v4175_v13 = vld [vmem:[%s6351_s25] sm:$0x1]  ;;  %s5251_s25 = sshll.u32 %s5313_s0, 4  ;;  %s5252_s25 = int_to_ptr.vmem [resolvable:$false] %s5251_s25 }
0x1363   : > { %s5253_s7 = scalar_lea.vmem %s5252_s25, 32  ;;  %p5254_p0 = scmp.lt.s32.totalorder %s6232_s30, %s5252_s25 }
0x1364   : > { %p5255_p1 = scmp.lt.s32.totalorder %s5253_s7, %s5247_s4 }
0x1365   : > { %5089 = vmatpush3.bf16.msra.mxu1 %v5198_v59 }
0x1366   : > { %p5256_p2 = por %p5255_p1, %p5254_p0 }
0x1368   : > { %p5257_p3 = pnand %p5256_p2, %p5250_p13 }
0x1433   : > { %v4163_v63 = vpop.f32.mrb[100].mxu1 }
0x1434   : > { %v4164_v0 = vadd.f32 %v4163_v63, %v4113_v62  ;;  %v5084_v1 = vpop.f32.mrb[101].mxu1 }
0x1435   : > { %v4166_v2 = vpop.f32.mrb[102].mxu1 }
0x1436   : > { %5245 = vtanh.f32 %v4164_v0  ;;  %v5085_v3 = vpop.f32.mrb[103].mxu1 }
0x1440   : > { %v5246_v4 = vpop.eup %5245 }
0x1441   : > { %v4170_v55 = vpack.c.bf16 %v5246_v4, %v5246_v4 }
0x1443   : > { %5091 = vmatmul.mubr.msk.bf16.vlgmr.msra.gmra.mrb[104].mxu1 %vm814_vm0, %v4170_v55 }
0x1516   : > { %v4225_v5 = vpop.f32.mrb[104].mxu1 }
0x1517   : > { %v4226_v6 = vadd.f32 %v4225_v5, %v4175_v13  ;;  %v5092_v16 = vpop.f32.mrb[105].mxu1 }
0x1518   : > { %v4228_v7 = vpop.f32.mrb[106].mxu1 }
0x1519   : > { %v5093_v8 = vpop.f32.mrb[107].mxu1  ;;  %4232 = vst.msk [vmem:[%s792_s10] sm:$0x1] %vm4231_vm5, %v4226_v6 }
0x151a   : > { %5260 = shalt.err (!%p5257_p3)
}
0x151b   : > { %s5261_s28 = scalar_lea.hbm %s6230_s5, 16  ;;  %s5265_s27 = scalar_lea.hbm %s6353_s1, 32 }
0x151c   : > { %p5262_p4 = scmp.ne.s32.totalorder %s6230_s5, %s5261_s28  ;;  %p5266_p9 = scmp.lt.u32.totalorder %s6230_s5, %s6353_s1 }
0x151d   : > { %p5267_p10 = scmp.lt.u32.totalorder %s5265_s27, %s5261_s28  ;;  %p5269_p12 = scmp.lt.u32.totalorder %s5261_s28, %s6230_s5 }
0x151e   : > { %p5263_p7 = pnand %p5262_p4, %p5487_p5 }
0x151f   : > { %p5268_p11 = por %p5267_p10, %p5266_p9 }
0x1520   : > { %p5264_p8 = pneg %p5263_p7 }
0x1521   : > { %p5270_p13 = por %p5269_p12, %p5268_p11 }
0x1523   : > { %p5271_p0 = pnand %p5270_p13, %p5264_p8 }
0x1525   : > { %5274 = shalt.err (!%p5271_p0)
}
0x1526   : > { %5094 = dma.vmem_to_hbm [thread:$0]  (%p5487_p5), %s6232_s30, 16, %s6230_s5, %s4234_s8  }
0x1527 PF: > { %s6354_s4 = sld [smem:[#allocation7_spill]]  ;;  %s6355_s7 = sld [smem:[#allocation5_spill]] }
0x152d   : > { %p5100_p1 = scmp.ge.s32.totalorder %s6354_s4, 2  ;;  %s4258_s10 = sand.u32 1, %s6355_s7  }
0x152e   : > { %s4259_s0 = scalar_lea.sflag [#allocation3], %s4258_s10 }
0x152f   : > { %p5097_p2 = pnand %p5100_p1, %p5491_p6 }
0x1531   : > { %5292 = dma.done.wait (!%p5097_p2), %s4259_s0, 16  }
0x1532   : > { %5294 = vsyncadd (!%p5097_p2), %s4259_s0, 4294967280  ;;  %s6357_s28 = sld [smem:[#allocation8_spill]]  ;;  %s6358_s25 = sld [smem:[#allocation6_spill]] }
0x1533   : > { %s6359_s7 = sld [smem:[#allocation9_spill]]  ;;  %s6360_s27 = smov %s5301_s3 }
0x1538   : > { %p36_p3 = scmp.ge.s32.totalorder %s6357_s28, 4   ;;  %s6361_s3 = smov %s6358_s25 }
0x153a   :  { %38 = sbr.rel (!%p36_p3) target bundleno = 17 (0x11), region = 178 }
0x1541   :  { %4263 = vsyncpa [#allocation3], 1 }
0x1542   :  { %4265 = vsyncpa [#allocation3 + $0x1], 1 }

</bundles_post_ra>
